<compile_context>
chip_gen: v7x
topology: tpu7x:2x2x1
jax: 0.10.0
libtpu: 0.0.40
codegen_flags: <defaults>
</compile_context>

<pallas_src>
import functools

import jax
import jax.numpy as jnp
from jax.experimental import pallas as pl
from jax.experimental.pallas import tpu as pltpu


def _round_up(x, m):
    return (x + m - 1) // m * m


def _conv_bn_tanh_kernel(patches_ref, w_ref, gamma_ref, beta_ref, out_ref,
                         slab_ref, sum_ref, sq_ref, scale_ref, bias_ref,
                         *, count, eps, cache_conv):
    phase = pl.program_id(0)   # 0: conv matmul + batch stats, 1: BN + tanh
    i = pl.program_id(1)       # M-tile index

    @pl.when(jnp.logical_and(phase == 0, i == 0))
    def _():
        sum_ref[...] = jnp.zeros_like(sum_ref)
        sq_ref[...] = jnp.zeros_like(sq_ref)

    @pl.when(phase == 0)
    def _():
        # bf16 operands, f32 MXU accumulation.
        y = jnp.dot(patches_ref[...], w_ref[...],
                    preferred_element_type=jnp.float32)
        if cache_conv:
            slab_ref[i] = y
        sum_ref[...] += jnp.sum(y, axis=0, keepdims=True)
        sq_ref[...] += jnp.sum(y * y, axis=0, keepdims=True)

    @pl.when(jnp.logical_and(phase == 1, i == 0))
    def _():
        inv_count = jnp.float32(1.0 / count)
        mean = sum_ref[...] * inv_count
        var = sq_ref[...] * inv_count - mean * mean      # biased var (training-mode BN)
        invstd = jax.lax.rsqrt(var + jnp.float32(eps))
        scale = gamma_ref[...] * invstd
        scale_ref[...] = scale
        bias_ref[...] = beta_ref[...] - mean * scale

    @pl.when(phase == 1)
    def _():
        if cache_conv:
            y = slab_ref[i]
        else:
            y = jnp.dot(patches_ref[...], w_ref[...],
                        preferred_element_type=jnp.float32)
        out_ref[...] = jnp.tanh(y * scale_ref[...] + bias_ref[...])


def conv_block_forward(x_nchw, weight, gamma, beta, *, stride, padding,
                       eps=1e-5, tile_m=512):
    """ConvBlock forward.

    x_nchw : [N, C_in, H, W] float32
    weight : [C_out, C_in, kh, kw] float32 (PyTorch Conv2d layout, bias=False)
    gamma, beta : [C_out] BatchNorm2d affine parameters
    Returns: [N, C_out, H_out, W_out] float32
    """
    N, C_in, H, W = x_nchw.shape
    C_out, _, kh, kw = weight.shape
    H_out = (H - kh + 2 * padding) // stride + 1
    W_out = (W - kw + 2 * padding) // stride + 1
    M = N * H_out * W_out
    K = kh * kw * C_in

    C_pad = _round_up(C_out, 128)                 # lane-dense channel axis
    tile_m = _round_up(min(tile_m, M), 16)        # big, bf16-sublane-aligned tiles
    M_pad = _round_up(M, tile_m)
    n_tiles = M_pad // tile_m

    # ---- glue: NCHW -> NHWC, spatial pad, im2col patches ----
    x_nhwc = jnp.transpose(x_nchw, (0, 2, 3, 1)).astype(jnp.float32)
    xp = jnp.pad(x_nhwc, ((0, 0), (padding, padding), (padding, padding), (0, 0)))
    taps = []
    for dh in range(kh):
        for dw in range(kw):
            taps.append(xp[:, dh:dh + stride * H_out:stride,
                           dw:dw + stride * W_out:stride, :])
    patches = jnp.concatenate(taps, axis=-1).reshape(M, K)
    # Zero-pad M (padded rows contribute 0 to the stats) and cast to bf16.
    patches = jnp.pad(patches, ((0, M_pad - M), (0, 0))).astype(jnp.bfloat16)

    # weight [C_out, C_in, kh, kw] -> [K, C_pad] (zero-padded channels), bf16.
    w_mat = jnp.transpose(weight, (2, 3, 1, 0)).reshape(K, C_out).astype(jnp.float32)
    w_mat = jnp.pad(w_mat, ((0, 0), (0, C_pad - C_out))).astype(jnp.bfloat16)
    gamma_p = jnp.pad(gamma.astype(jnp.float32), (0, C_pad - C_out)).reshape(1, C_pad)
    beta_p = jnp.pad(beta.astype(jnp.float32), (0, C_pad - C_out)).reshape(1, C_pad)

    # Cache the f32 conv result in a persistent VMEM slab when it fits; otherwise
    # recompute the (bandwidth-dominated) matmul in phase 1.
    full_slab_bytes = n_tiles * tile_m * C_pad * 4
    cache_conv = full_slab_bytes <= (24 << 20)
    slab_tiles = n_tiles if cache_conv else 1

    io_bytes = 2 * (tile_m * C_pad * 4) + 2 * (tile_m * K * 2) + 2 * (K * C_pad * 2)
    vmem_limit = int(min(max(slab_tiles * tile_m * C_pad * 4 + 2 * io_bytes + (2 << 20),
                             16 << 20), 48 << 20))

    if cache_conv:
        patches_map = lambda p, i: ((1 - p) * i, 0)   # phase 1 reads from the slab
    else:
        patches_map = lambda p, i: (i, 0)             # phase 1 re-reads its tile

    kernel = functools.partial(_conv_bn_tanh_kernel, count=float(M),
                               eps=float(eps), cache_conv=cache_conv)

    out = pl.pallas_call(
        kernel,
        out_shape=jax.ShapeDtypeStruct((M_pad, C_pad), jnp.float32),
        grid_spec=pltpu.PrefetchScalarGridSpec(
            num_scalar_prefetch=0,
            grid=(2, n_tiles),                                       # (phase, m_tile)
            in_specs=[
                pl.BlockSpec((tile_m, K), patches_map),
                pl.BlockSpec((K, C_pad), lambda p, i: (0, 0)),       # resident weights
                pl.BlockSpec((1, C_pad), lambda p, i: (0, 0)),       # gamma
                pl.BlockSpec((1, C_pad), lambda p, i: (0, 0)),       # beta
            ],
            out_specs=pl.BlockSpec((tile_m, C_pad), lambda p, i: (p * i, 0)),
            scratch_shapes=[
                pltpu.VMEM((slab_tiles, tile_m, C_pad), jnp.float32),  # conv slab
                pltpu.VMEM((1, C_pad), jnp.float32),                   # sum
                pltpu.VMEM((1, C_pad), jnp.float32),                   # sum of squares
                pltpu.VMEM((1, C_pad), jnp.float32),                   # BN scale
                pltpu.VMEM((1, C_pad), jnp.float32),                   # BN bias
            ]),
        compiler_params=pltpu.CompilerParams(
            dimension_semantics=("arbitrary", "arbitrary"),
            vmem_limit_bytes=vmem_limit),
    )(patches, w_mat, gamma_p, beta_p)

    y = out[:M, :C_out].reshape(N, H_out, W_out, C_out)
    return jnp.transpose(y, (0, 3, 1, 2))


def _reference(x_nchw, weight, gamma, beta, *, stride, padding, eps=1e-5,
               conv_dtype=jnp.float32):
    """Pure-JAX reference of ConvBlock.forward (training-mode BN)."""
    conv = jax.lax.conv_general_dilated(
        x_nchw.astype(conv_dtype), weight.astype(conv_dtype),
        window_strides=(stride, stride),
        padding=[(padding, padding), (padding, padding)],
        dimension_numbers=("NCHW", "OIHW", "NCHW"),
        preferred_element_type=jnp.float32).astype(jnp.float32)
    mean = jnp.mean(conv, axis=(0, 2, 3), keepdims=True)
    var = jnp.mean(jnp.square(conv - mean), axis=(0, 2, 3), keepdims=True)
    norm = (conv - mean) * jax.lax.rsqrt(var + eps)
    g = gamma.reshape(1, -1, 1, 1)
    b = beta.reshape(1, -1, 1, 1)
    return jnp.tanh(norm * g + b)


if __name__ == "__main__":
    # ConvBlock(input_size=16, in_channels=4, out_channels=8, kernel_size=3, stride=1)
    # padding=None -> padding = ((stride-1)*16 - stride + 3)//2 = 1 -> 16x16 output
    input_size, in_channels, out_channels, kernel_size, stride = 16, 4, 8, 3, 1
    padding = int(((stride - 1) * input_size - stride + kernel_size) // 2)

    key = jax.random.PRNGKey(0)
    kx, kw_, kg, kb = jax.random.split(key, 4)
    N = 2
    x = jax.random.normal(kx, (N, in_channels, input_size, input_size), jnp.float32)
    weight = jax.random.normal(
        kw_, (out_channels, in_channels, kernel_size, kernel_size), jnp.float32) * 0.1
    gamma = 1.0 + 0.1 * jax.random.normal(kg, (out_channels,), jnp.float32)
    beta = 0.1 * jax.random.normal(kb, (out_channels,), jnp.float32)

    out = conv_block_forward(x, weight, gamma, beta, stride=stride, padding=padding)
    out = jax.block_until_ready(out)
    assert out.shape == (N, out_channels, input_size, input_size)

    # Matched-precision reference (bf16 conv operands, f32 accumulation) -> tight check.
    ref_bf16 = _reference(x, weight, gamma, beta, stride=stride, padding=padding,
                          conv_dtype=jnp.bfloat16)
    assert jnp.allclose(out, ref_bf16, rtol=1e-3, atol=1e-3), \
        "mismatch vs matched-precision reference"

    # Full-f32 reference -> loose check (bf16 MXU rounding only).
    ref_f32 = _reference(x, weight, gamma, beta, stride=stride, padding=padding,
                         conv_dtype=jnp.float32)
    assert jnp.allclose(out, ref_f32, rtol=0.0, atol=5e-2), "mismatch vs f32 reference"

    print("KERNEL_OK")
</pallas_src>

<mosaic_0001>
module attributes {stable_mosaic.version = 11 : i64} {
  func.func @_conv_bn_tanh_kernel(%arg0: i32, %arg1: i32, %arg2: memref<512x36xbf16, #tpu.memory_space<vmem>>, %arg3: memref<36x128xbf16, #tpu.memory_space<vmem>>, %arg4: memref<1x128xf32, #tpu.memory_space<vmem>>, %arg5: memref<1x128xf32, #tpu.memory_space<vmem>>, %arg6: memref<512x128xf32, #tpu.memory_space<vmem>>, %arg7: memref<1x512x128xf32, #tpu.memory_space<vmem>>, %arg8: memref<1x128xf32, #tpu.memory_space<vmem>>, %arg9: memref<1x128xf32, #tpu.memory_space<vmem>>, %arg10: memref<1x128xf32, #tpu.memory_space<vmem>>, %arg11: memref<1x128xf32, #tpu.memory_space<vmem>>) attributes {dimension_semantics = [#tpu.dimension_semantics<arbitrary>, #tpu.dimension_semantics<arbitrary>], iteration_bounds = array<i64: 2, 1>, scalar_prefetch = 0 : i64, scratch_operands = 5 : i64, tpu.core_type = #tpu.core_type<tc>, window_params = [{transform_indices = @transform_0, window_bounds = array<i64: 512, 36>}, {pipeline_mode = #tpu.pipeline_mode<synchronous>, transform_indices = @transform_1, window_bounds = array<i64: 36, 128>}, {pipeline_mode = #tpu.pipeline_mode<synchronous>, transform_indices = @transform_2, window_bounds = array<i64: 1, 128>}, {pipeline_mode = #tpu.pipeline_mode<synchronous>, transform_indices = @transform_3, window_bounds = array<i64: 1, 128>}, {transform_indices = @transform_4, window_bounds = array<i64: 512, 128>}]} {
    %c0_i32 = arith.constant 0 : i32
    %0 = arith.cmpi eq, %arg0, %c0_i32 : i32
    %c0_i32_0 = arith.constant 0 : i32
    %1 = arith.cmpi eq, %arg1, %c0_i32_0 : i32
    %2 = arith.andi %0, %1 : i1
    %3 = arith.extui %2 : i1 to i32
    %c0_i32_1 = arith.constant 0 : i32
    %4 = arith.cmpi ne, %3, %c0_i32_1 : i32
    scf.if %4 {
      %cst = arith.constant 0.000000e+00 : f32
      %16 = vector.broadcast %cst : f32 to vector<1x128xf32>
      %c0 = arith.constant 0 : index
      %c0_8 = arith.constant 0 : index
      %17 = vector.load %arg8[%c0, %c0_8] : memref<1x128xf32, #tpu.memory_space<vmem>>, vector<1x128xf32>
      tpu.vector_store %arg8[%c0, %c0_8], %16 {strides = array<i32>} : memref<1x128xf32, #tpu.memory_space<vmem>>, vector<1x128xf32>,
      %cst_9 = arith.constant 0.000000e+00 : f32
      %18 = vector.broadcast %cst_9 : f32 to vector<1x128xf32>
      %c0_10 = arith.constant 0 : index
      %c0_11 = arith.constant 0 : index
      %19 = vector.load %arg9[%c0_10, %c0_11] : memref<1x128xf32, #tpu.memory_space<vmem>>, vector<1x128xf32>
      tpu.vector_store %arg9[%c0_10, %c0_11], %18 {strides = array<i32>} : memref<1x128xf32, #tpu.memory_space<vmem>>, vector<1x128xf32>,
    } else {
    }
    %c0_i32_2 = arith.constant 0 : i32
    %5 = arith.cmpi eq, %arg0, %c0_i32_2 : i32
    %6 = arith.extui %5 : i1 to i32
    %c0_i32_3 = arith.constant 0 : i32
    %7 = arith.cmpi ne, %6, %c0_i32_3 : i32
    scf.if %7 {
      %c0 = arith.constant 0 : index
      %c0_8 = arith.constant 0 : index
      %16 = vector.load %arg2[%c0, %c0_8] : memref<512x36xbf16, #tpu.memory_space<vmem>>, vector<512x36xbf16>
      %c0_9 = arith.constant 0 : index
      %c0_10 = arith.constant 0 : index
      %17 = vector.load %arg3[%c0_9, %c0_10] : memref<36x128xbf16, #tpu.memory_space<vmem>>, vector<36x128xbf16>
      %cst = arith.constant dense<0.000000e+00> : vector<512x128xf32>
      %18 = tpu.matmul %16, %17, %cst {dimension_numbers = #tpu.dot_dimension_numbers<[1], [0], [0], [1], [0, 0, 1, 1], [], []>} : vector<512x36xbf16>, vector<36x128xbf16>, vector<512x128xf32> -> vector<512x128xf32>
      %19 = arith.index_cast %arg1 : i32 to index
      %c0_11 = arith.constant 0 : index
      %c0_12 = arith.constant 0 : index
      %20 = vector.load %arg7[%19, %c0_11, %c0_12] : memref<1x512x128xf32, #tpu.memory_space<vmem>>, vector<1x512x128xf32>
      %21 = vector.shape_cast %20 : vector<1x512x128xf32> to vector<512x128xf32>
      %22 = vector.shape_cast %18 : vector<512x128xf32> to vector<1x512x128xf32>
      tpu.vector_store %arg7[%19, %c0_11, %c0_12], %22 {strides = array<i32>} : memref<1x512x128xf32, #tpu.memory_space<vmem>>, vector<1x512x128xf32>,
      %c0_13 = arith.constant 0 : index
      %c0_14 = arith.constant 0 : index
      %23 = vector.load %arg8[%c0_13, %c0_14] : memref<1x128xf32, #tpu.memory_space<vmem>>, vector<1x128xf32>
      %cst_15 = arith.constant dense<0.000000e+00> : vector<128xf32>
      %24 = vector.multi_reduction <add>, %18, %cst_15 [0] : vector<512x128xf32> to vector<128xf32>
      %25 = vector.shape_cast %24 : vector<128xf32> to vector<1x128xf32>
      %26 = arith.addf %23, %25 : vector<1x128xf32>
      %c0_16 = arith.constant 0 : index
      %c0_17 = arith.constant 0 : index
      %27 = vector.load %arg8[%c0_16, %c0_17] : memref<1x128xf32, #tpu.memory_space<vmem>>, vector<1x128xf32>
      tpu.vector_store %arg8[%c0_16, %c0_17], %26 {strides = array<i32>} : memref<1x128xf32, #tpu.memory_space<vmem>>, vector<1x128xf32>,
      %c0_18 = arith.constant 0 : index
      %c0_19 = arith.constant 0 : index
      %28 = vector.load %arg9[%c0_18, %c0_19] : memref<1x128xf32, #tpu.memory_space<vmem>>, vector<1x128xf32>
      %29 = arith.mulf %18, %18 : vector<512x128xf32>
      %cst_20 = arith.constant dense<0.000000e+00> : vector<128xf32>
      %30 = vector.multi_reduction <add>, %29, %cst_20 [0] : vector<512x128xf32> to vector<128xf32>
      %31 = vector.shape_cast %30 : vector<128xf32> to vector<1x128xf32>
      %32 = arith.addf %28, %31 : vector<1x128xf32>
      %c0_21 = arith.constant 0 : index
      %c0_22 = arith.constant 0 : index
      %33 = vector.load %arg9[%c0_21, %c0_22] : memref<1x128xf32, #tpu.memory_space<vmem>>, vector<1x128xf32>
      tpu.vector_store %arg9[%c0_21, %c0_22], %32 {strides = array<i32>} : memref<1x128xf32, #tpu.memory_space<vmem>>, vector<1x128xf32>,
    } else {
    }
    %c1_i32 = arith.constant 1 : i32
    %8 = arith.cmpi eq, %arg0, %c1_i32 : i32
    %c0_i32_4 = arith.constant 0 : i32
    %9 = arith.cmpi eq, %arg1, %c0_i32_4 : i32
    %10 = arith.andi %8, %9 : i1
    %11 = arith.extui %10 : i1 to i32
    %c0_i32_5 = arith.constant 0 : i32
    %12 = arith.cmpi ne, %11, %c0_i32_5 : i32
    scf.if %12 {
      %c0 = arith.constant 0 : index
      %c0_8 = arith.constant 0 : index
      %16 = vector.load %arg8[%c0, %c0_8] : memref<1x128xf32, #tpu.memory_space<vmem>>, vector<1x128xf32>
      %cst = arith.constant 0.001953125 : f32
      %17 = vector.broadcast %cst : f32 to vector<1x128xf32>
      %18 = arith.mulf %16, %17 : vector<1x128xf32>
      %c0_9 = arith.constant 0 : index
      %c0_10 = arith.constant 0 : index
      %19 = vector.load %arg9[%c0_9, %c0_10] : memref<1x128xf32, #tpu.memory_space<vmem>>, vector<1x128xf32>
      %cst_11 = arith.constant 0.001953125 : f32
      %20 = vector.broadcast %cst_11 : f32 to vector<1x128xf32>
      %21 = arith.mulf %19, %20 : vector<1x128xf32>
      %22 = arith.mulf %18, %18 : vector<1x128xf32>
      %23 = arith.subf %21, %22 : vector<1x128xf32>
      %cst_12 = arith.constant 9.99999974E-6 : f32
      %24 = vector.broadcast %cst_12 : f32 to vector<1x128xf32>
      %25 = arith.addf %23, %24 : vector<1x128xf32>
      %26 = math.rsqrt %25 : vector<1x128xf32>
      %c0_13 = arith.constant 0 : index
      %c0_14 = arith.constant 0 : index
      %27 = vector.load %arg4[%c0_13, %c0_14] : memref<1x128xf32, #tpu.memory_space<vmem>>, vector<1x128xf32>
      %28 = arith.mulf %27, %26 : vector<1x128xf32>
      %c0_15 = arith.constant 0 : index
      %c0_16 = arith.constant 0 : index
      %29 = vector.load %arg10[%c0_15, %c0_16] : memref<1x128xf32, #tpu.memory_space<vmem>>, vector<1x128xf32>
      tpu.vector_store %arg10[%c0_15, %c0_16], %28 {strides = array<i32>} : memref<1x128xf32, #tpu.memory_space<vmem>>, vector<1x128xf32>,
      %c0_17 = arith.constant 0 : index
      %c0_18 = arith.constant 0 : index
      %30 = vector.load %arg5[%c0_17, %c0_18] : memref<1x128xf32, #tpu.memory_space<vmem>>, vector<1x128xf32>
      %31 = arith.mulf %18, %28 : vector<1x128xf32>
      %32 = arith.subf %30, %31 : vector<1x128xf32>
      %c0_19 = arith.constant 0 : index
      %c0_20 = arith.constant 0 : index
      %33 = vector.load %arg11[%c0_19, %c0_20] : memref<1x128xf32, #tpu.memory_space<vmem>>, vector<1x128xf32>
      tpu.vector_store %arg11[%c0_19, %c0_20], %32 {strides = array<i32>} : memref<1x128xf32, #tpu.memory_space<vmem>>, vector<1x128xf32>,
    } else {
    }
    %c1_i32_6 = arith.constant 1 : i32
    %13 = arith.cmpi eq, %arg0, %c1_i32_6 : i32
    %14 = arith.extui %13 : i1 to i32
    %c0_i32_7 = arith.constant 0 : i32
    %15 = arith.cmpi ne, %14, %c0_i32_7 : i32
    scf.if %15 {
      %16 = arith.index_cast %arg1 : i32 to index
      %c0 = arith.constant 0 : index
      %c0_8 = arith.constant 0 : index
      %17 = vector.load %arg7[%16, %c0, %c0_8] : memref<1x512x128xf32, #tpu.memory_space<vmem>>, vector<1x512x128xf32>
      %18 = vector.shape_cast %17 : vector<1x512x128xf32> to vector<512x128xf32>
      %c0_9 = arith.constant 0 : index
      %c0_10 = arith.constant 0 : index
      %19 = vector.load %arg10[%c0_9, %c0_10] : memref<1x128xf32, #tpu.memory_space<vmem>>, vector<1x128xf32>
      %20 = vector.broadcast %19 : vector<1x128xf32> to vector<512x128xf32>
      %21 = arith.mulf %18, %20 : vector<512x128xf32>
      %c0_11 = arith.constant 0 : index
      %c0_12 = arith.constant 0 : index
      %22 = vector.load %arg11[%c0_11, %c0_12] : memref<1x128xf32, #tpu.memory_space<vmem>>, vector<1x128xf32>
      %23 = vector.broadcast %22 : vector<1x128xf32> to vector<512x128xf32>
      %24 = arith.addf %21, %23 : vector<512x128xf32>
      %25 = math.tanh %24 : vector<512x128xf32>
      %c0_13 = arith.constant 0 : index
      %c0_14 = arith.constant 0 : index
      %26 = vector.load %arg6[%c0_13, %c0_14] : memref<512x128xf32, #tpu.memory_space<vmem>>, vector<512x128xf32>
      tpu.vector_store %arg6[%c0_13, %c0_14], %25 {strides = array<i32>} : memref<512x128xf32, #tpu.memory_space<vmem>>, vector<512x128xf32>,
    } else {
    }
    return
  }
  func.func @transform_0(%arg0: i32, %arg1: i32) -> (i32, i32) {
    %c1_i32 = arith.constant 1 : i32
    %0 = arith.subi %c1_i32, %arg0 : i32
    %1 = arith.muli %0, %arg1 : i32
    %c0_i32 = arith.constant 0 : i32
    %c0_i32_0 = arith.constant 0 : i32
    return %1, %c0_i32 : i32, i32
  }
  func.func @transform_1(%arg0: i32, %arg1: i32) -> (i32, i32) {
    %c0_i32 = arith.constant 0 : i32
    %c0_i32_0 = arith.constant 0 : i32
    %c0_i32_1 = arith.constant 0 : i32
    return %c0_i32, %c0_i32_0 : i32, i32
  }
  func.func @transform_2(%arg0: i32, %arg1: i32) -> (i32, i32) {
    %c0_i32 = arith.constant 0 : i32
    %c0_i32_0 = arith.constant 0 : i32
    %c0_i32_1 = arith.constant 0 : i32
    return %c0_i32, %c0_i32_0 : i32, i32
  }
  func.func @transform_3(%arg0: i32, %arg1: i32) -> (i32, i32) {
    %c0_i32 = arith.constant 0 : i32
    %c0_i32_0 = arith.constant 0 : i32
    %c0_i32_1 = arith.constant 0 : i32
    return %c0_i32, %c0_i32_0 : i32, i32
  }
  func.func @transform_4(%arg0: i32, %arg1: i32) -> (i32, i32) {
    %0 = arith.muli %arg0, %arg1 : i32
    %c0_i32 = arith.constant 0 : i32
    %c0_i32_0 = arith.constant 0 : i32
    return %0, %c0_i32 : i32, i32
  }
}

</mosaic_0001>

<bundles_post_ra>
// kernel: tpu_custom_call.1
= control target key start
LH: loop header
LB: loop body
LE: loop exit
PB: predicated region body
PF: predicated region fallthrough
CT: control target
= control target key end

     0   :  { %9 = vsyncpa [#allocation8], 0  ;;  %s2610_s0 = inlined_call_operand.vmem [shape: bf16[512,36], index: 0, kind: input, shape index: {}]   ;;  %s2611_s1 = inlined_call_operand.vmem [shape: bf16[36,128], index: 1, kind: input, shape index: {}]   ;;  %s2612_s2 = inlined_call_operand.vmem [shape: f32[1,128], index: 2, kind: input, shape index: {}]   ;;  %s2613_s3 = inlined_call_operand.vmem [shape: f32[1,128], index: 3, kind: input, shape index: {}]   ;;  %s2614_s4 = inlined_call_operand.hbm [shape: f32[512,128], index: 4, kind: output, shape index: {}]  }
   0x1   :  { %11 = vsyncpa [#allocation8 + $0x1], 0  ;;  %s2081_s15 = smov 0   ;;  %s2083_s16 = smov 0  }
   0x2   :  { %s2085_s17 = smov 0  }
   0x3 LB: > { %s1596_s18 = sadd.s32 4294967295, %s2050_s17   ;;  %s1597_s19 = sadd.s32 4294967294, %s2050_s17   ;;  %s2050_s17 = sphi %s2085_s17, %s17_s17   ;;  %s2046_s16 = sphi %s2083_s16, %s2617_s16   ;;  %s2042_s15 = sphi %s2081_s15, %s2616_s15  }
   0x4   : > { %s29_s20 = sadd.s32 1, %s2046_s16  ;;  %p1601_p0 = scmp.ge.s32.totalorder %s2050_s17, 1 }
   0x5   : > { %p31_p1 = scmp.ge.s32.totalorder %s29_s20, 2  ;;  %p188_p2 = scmp.lt.s32.totalorder %s2050_s17, 3 }
   0x7   : > { %s2619_s20 = smov (%p31_p1, %s29_s20), 0  ;;  %p189_p3 = pnand %p1601_p0, %p188_p2 }
   0x8   : > { %p229_p4 = scmp.eq.s32.totalorder (!%p189_p3), %s2042_s15, 0 }
   0x9   : > { %192 = sbr.rel (%p189_p3) target bundleno = 534 (0x216), region = 36 }
  0x10   : > { %234 = sbr.rel (!%p229_p4) target bundleno = 23 (0x17), region = 40  ;;  %v2052_v0 = vmov (%p229_p4), 0.0  }
  0x11   : > { %235 = vst [vmem:[#allocation3] sm:$0x1] (%p229_p4), %v2052_v0  ;;  %236 = vst [vmem:[#allocation4] sm:$0x1] (%p229_p4), %v2052_v0 }
  0x17 PF: > { %p1603_p5 = scmp.ne.s32.totalorder %s2042_s15, 0 }
  0x18   : > { %v1833_v1 = vld [vmem:[%s2611_s1] sm:$0xff] (!%p1603_p5)   ;;  %v1834_v2 = vld [vmem:[%s2611_s1 + $0x8] sm:$0xff] (!%p1603_p5)   ;;  %vm484_vm0 = vcmask (!%p1603_p5), 293888   ;;  %v1835_v3 = vld [vmem:[%s2611_s1 + $0x10] ss:$0 sps:$4 sm:$0x33] (!%p1603_p5)  }
  0x19   : > { %239 = sbr.rel (%p1603_p5) target bundleno = 395 (0x18b), region = 44  ;;  %1716 = vmatprep.subr.bf16.mxu0 (!%p1603_p5), %v1833_v1  ;;  %v1836_v4 = vld [vmem:[%s2610_s0] sm:$0xff] (!%p1603_p5)   ;;  %1786 = vmatprep.subr.bf16.mxu1 (!%p1603_p5), %v1833_v1  ;;  %vm581_vm1 = vcmask (!%p1603_p5), 1041408   ;;  %v1837_v6 = vld [vmem:[%s2610_s0 + $0x8] sm:$0xff] (!%p1603_p5)   ;;  %v1838_v7 = vld [vmem:[%s2610_s0 + $0x10] sm:$0xff] (!%p1603_p5)  }
  0x1a   : > { %1717 = vmatpush3.bf16.msra.mxu0 (!%p1603_p5), %v1833_v1  ;;  %1789 = vmatpush3.bf16.msra.mxu1 (!%p1603_p5), %v1833_v1  ;;  %v583_v5 = vsel (!%p1603_p5), %vm581_vm1, %v1835_v3, 0  ;;  %v1839_v8 = vld [vmem:[%s2610_s0 + $0x18] sm:$0xff] (!%p1603_p5)   ;;  %v1840_v9 = vld [vmem:[%s2610_s0 + $0x20] sm:$0xff] (!%p1603_p5)   ;;  %v1853_v11 = vld [vmem:[%s2610_s0 + $0x88] sm:$0xff] (!%p1603_p5)  }
  0x1b   : > { %1718 = vmatprep.subr.bf16.mxu0 (!%p1603_p5), %v1834_v2  ;;  %1722 = vmatprep.mubr.msk.bf16.mxu0 (!%p1603_p5), %vm484_vm0, %v1836_v4  ;;  %v1852_v10 = vld [vmem:[%s2610_s0 + $0x80] sm:$0xff] (!%p1603_p5)   ;;  %v1854_v12 = vld [vmem:[%s2610_s0 + $0x90] sm:$0xff] (!%p1603_p5)   ;;  %v1841_v13 = vld [vmem:[%s2610_s0 + $0x28] sm:$0xff] (!%p1603_p5)  }
  0x1c   : > { %1787 = vmatprep.subr.bf16.mxu1 (!%p1603_p5), %v1834_v2  ;;  %1754 = vmatprep.mubr.msk.bf16.mxu1 (!%p1603_p5), %vm484_vm0, %v1852_v10  ;;  %v1842_v14 = vld [vmem:[%s2610_s0 + $0x30] sm:$0xff] (!%p1603_p5)   ;;  %v1855_v15 = vld [vmem:[%s2610_s0 + $0x98] sm:$0xff] (!%p1603_p5)   ;;  %v1856_v16 = vld [vmem:[%s2610_s0 + $0xa0] sm:$0xff] (!%p1603_p5)  }
  0x1d   : > { %v1843_v17 = vld [vmem:[%s2610_s0 + $0x38] sm:$0xff] (!%p1603_p5)   ;;  %v1857_v18 = vld [vmem:[%s2610_s0 + $0xa8] sm:$0xff] (!%p1603_p5)   ;;  %v1844_v19 = vld [vmem:[%s2610_s0 + $0x40] sm:$0xff] (!%p1603_p5)  }
  0x1e   : > { %1719 = vmatpush3.bf16.msra.mxu0 (!%p1603_p5), %v1834_v2  ;;  %1790 = vmatpush3.bf16.msra.mxu1 (!%p1603_p5), %v1834_v2  ;;  %v1858_v20 = vld [vmem:[%s2610_s0 + $0xb0] sm:$0xff] (!%p1603_p5)   ;;  %v1845_v21 = vld [vmem:[%s2610_s0 + $0x48] sm:$0xff] (!%p1603_p5)   ;;  %v1859_v22 = vld [vmem:[%s2610_s0 + $0xb8] sm:$0xff] (!%p1603_p5)  }
  0x1f   : > { %1792 = vmatprep.subr.msk.bf16.mxu0 (!%p1603_p5), %vm581_vm1, %v1835_v3  ;;  %1793 = vmatprep.subr.msk.bf16.mxu1 (!%p1603_p5), %vm581_vm1, %v1835_v3  ;;  %v1846_v23 = vld [vmem:[%s2610_s0 + $0x50] sm:$0xff] (!%p1603_p5)   ;;  %v1860_v24 = vld [vmem:[%s2610_s0 + $0xc0] sm:$0xff] (!%p1603_p5)   ;;  %v1847_v25 = vld [vmem:[%s2610_s0 + $0x58] sm:$0xff] (!%p1603_p5)  }
  0x20   : > { %v1861_v26 = vld [vmem:[%s2610_s0 + $0xc8] sm:$0xff]   ;;  %v1848_v27 = vld [vmem:[%s2610_s0 + $0x60] sm:$0xff]   ;;  %v1862_v28 = vld [vmem:[%s2610_s0 + $0xd0] sm:$0xff]  }
  0x21   : > { %v1849_v29 = vld [vmem:[%s2610_s0 + $0x68] sm:$0xff]   ;;  %v1863_v30 = vld [vmem:[%s2610_s0 + $0xd8] sm:$0xff]   ;;  %v1850_v31 = vld [vmem:[%s2610_s0 + $0x70] sm:$0xff]  }
  0x22   : > { %1721 = vmatpush3.bf16.msra.mxu0 %v583_v5  ;;  %1791 = vmatpush3.bf16.msra.mxu1 %v583_v5  ;;  %v1864_v32 = vld [vmem:[%s2610_s0 + $0xe0] sm:$0xff]   ;;  %v1851_v33 = vld [vmem:[%s2610_s0 + $0x78] sm:$0xff]   ;;  %v1865_v34 = vld [vmem:[%s2610_s0 + $0xe8] sm:$0xff]  }
  0x23   : > { %v1866_v35 = vld [vmem:[%s2610_s0 + $0xf0] sm:$0xff]   ;;  %v1867_v36 = vld [vmem:[%s2610_s0 + $0xf8] sm:$0xff]  }
  0x25   : > { %1723 = vmatmul.mubr.msk.bf16.vlgmr.msra.gmra.mrb[0].mxu0 %vm484_vm0, %v1837_v6  ;;  %1755 = vmatmul.mubr.msk.bf16.vlgmr.msra.gmra.mrb[0].mxu1 %vm484_vm0, %v1853_v11 }
  0x26   : > { %1726 = vmatprep.mubr.msk.bf16.mxu0 %vm484_vm0, %v1838_v7  ;;  %1758 = vmatprep.mubr.msk.bf16.mxu1 %vm484_vm0, %v1854_v12 }
  0x2d   : > { %1727 = vmatmul.mubr.msk.bf16.gmra.mrb[4].mxu0 %vm484_vm0, %v1839_v8  ;;  %1759 = vmatmul.mubr.msk.bf16.gmra.mrb[4].mxu1 %vm484_vm0, %v1855_v15 }
  0x2e   : > { %1730 = vmatprep.mubr.msk.bf16.mxu0 %vm484_vm0, %v1840_v9  ;;  %1762 = vmatprep.mubr.msk.bf16.mxu1 %vm484_vm0, %v1856_v16 }
  0x35   : > { %1731 = vmatmul.mubr.msk.bf16.gmra.mrb[8].mxu0 %vm484_vm0, %v1841_v13  ;;  %1763 = vmatmul.mubr.msk.bf16.gmra.mrb[8].mxu1 %vm484_vm0, %v1857_v18 }
  0x36   : > { %1734 = vmatprep.mubr.msk.bf16.mxu0 %vm484_vm0, %v1842_v14  ;;  %1766 = vmatprep.mubr.msk.bf16.mxu1 %vm484_vm0, %v1858_v20 }
  0x3d   : > { %1735 = vmatmul.mubr.msk.bf16.gmra.mrb[12].mxu0 %vm484_vm0, %v1843_v17  ;;  %1767 = vmatmul.mubr.msk.bf16.gmra.mrb[12].mxu1 %vm484_vm0, %v1859_v22 }
  0x3e   : > { %1738 = vmatprep.mubr.msk.bf16.mxu0 %vm484_vm0, %v1844_v19  ;;  %1770 = vmatprep.mubr.msk.bf16.mxu1 %vm484_vm0, %v1860_v24 }
  0x45   : > { %1739 = vmatmul.mubr.msk.bf16.gmra.mrb[16].mxu0 %vm484_vm0, %v1845_v21  ;;  %1771 = vmatmul.mubr.msk.bf16.gmra.mrb[16].mxu1 %vm484_vm0, %v1861_v26 }
  0x46   : > { %1742 = vmatprep.mubr.msk.bf16.mxu0 %vm484_vm0, %v1846_v23  ;;  %1774 = vmatprep.mubr.msk.bf16.mxu1 %vm484_vm0, %v1862_v28 }
  0x4d   : > { %1743 = vmatmul.mubr.msk.bf16.gmra.mrb[20].mxu0 %vm484_vm0, %v1847_v25  ;;  %1775 = vmatmul.mubr.msk.bf16.gmra.mrb[20].mxu1 %vm484_vm0, %v1863_v30 }
  0x4e   : > { %1746 = vmatprep.mubr.msk.bf16.mxu0 %vm484_vm0, %v1848_v27  ;;  %1778 = vmatprep.mubr.msk.bf16.mxu1 %vm484_vm0, %v1864_v32 }
  0x55   : > { %1747 = vmatmul.mubr.msk.bf16.gmra.mrb[24].mxu0 %vm484_vm0, %v1849_v29  ;;  %1779 = vmatmul.mubr.msk.bf16.gmra.mrb[24].mxu1 %vm484_vm0, %v1865_v34 }
  0x56   : > { %1750 = vmatprep.mubr.msk.bf16.mxu0 %vm484_vm0, %v1850_v31  ;;  %1782 = vmatprep.mubr.msk.bf16.mxu1 %vm484_vm0, %v1866_v35 }
  0x5d   : > { %1751 = vmatmul.mubr.msk.bf16.gmra.mrb[28].mxu0 %vm484_vm0, %v1851_v33  ;;  %1783 = vmatmul.mubr.msk.bf16.gmra.mrb[28].mxu1 %vm484_vm0, %v1867_v36 }
  0xf8   : > { %v1724_v37 = vpop.f32.mrb[0].mxu0  ;;  %v2242_v51 = vpop.f32.mrb[0].mxu1 }
  0xf9   : > { %878 = vst [vmem:[#allocation2 + $0x10] sm:$0xff] %v1724_v37  ;;  %v619_v38 = vpop.f32.mrb[1].mxu0  ;;  %v1015_v44 = vmul.f32 %v1724_v37, %v1724_v37  ;;  %910 = vst [vmem:[#allocation2 + $0x110] sm:$0xff] %v2242_v51  ;;  %v2245_v53 = vpop.f32.mrb[1].mxu1 }
  0xfa   : > { %876 = vst [vmem:[#allocation2] sm:$0xff] %v619_v38  ;;  %v1725_v39 = vpop.f32.mrb[2].mxu0  ;;  %v1013_v41 = vmul.f32 %v619_v38, %v619_v38  ;;  %908 = vst [vmem:[#allocation2 + $0x100] sm:$0xff] %v2245_v53  ;;  %v2248_v58 = vpop.f32.mrb[2].mxu1 }
  0xfb   : > { %879 = vst [vmem:[#allocation2 + $0x18] sm:$0xff] %v1725_v39  ;;  %v622_v40 = vpop.f32.mrb[3].mxu0  ;;  %v1016_v47 = vmul.f32 %v1725_v39, %v1725_v39  ;;  %911 = vst [vmem:[#allocation2 + $0x118] sm:$0xff] %v2248_v58  ;;  %v2251_v60 = vpop.f32.mrb[3].mxu1 }
  0xfc   : > { %877 = vst [vmem:[#allocation2 + $0x8] sm:$0xff] %v622_v40  ;;  %v941_v42 = vadd.f32 %v622_v40, %v619_v38  ;;  %v1014_v43 = vmul.f32 %v622_v40, %v622_v40  ;;  %909 = vst [vmem:[#allocation2 + $0x108] sm:$0xff] %v2251_v60 }
  0xfe   : > { %v942_v45 = vadd.f32 %v1724_v37, %v941_v42  ;;  %v1077_v46 = vadd.f32 %v1014_v43, %v1013_v41 }
 0x100   : > { %v1078_v48 = vadd.f32 %v1077_v46, %v1015_v44  ;;  %v1728_v49 = vpop.f32.mrb[4].mxu0  ;;  %v943_v50 = vadd.f32 %v1725_v39, %v942_v45  ;;  %v2254_v7 = vpop.f32.mrb[4].mxu1 }
 0x101   : > { %882 = vst [vmem:[#allocation2 + $0x30] sm:$0xff] %v1728_v49  ;;  %v635_v52 = vpop.f32.mrb[5].mxu0  ;;  %v1019_v0 = vmul.f32 %v1728_v49, %v1728_v49  ;;  %914 = vst [vmem:[#allocation2 + $0x130] sm:$0xff] %v2254_v7  ;;  %v2257_v9 = vpop.f32.mrb[5].mxu1 }
 0x102   : > { %880 = vst [vmem:[#allocation2 + $0x20] sm:$0xff] %v635_v52  ;;  %v944_v54 = vadd.f32 %v943_v50, %v635_v52  ;;  %v1017_v55 = vmul.f32 %v635_v52, %v635_v52  ;;  %v1079_v56 = vadd.f32 %v1078_v48, %v1016_v47  ;;  %v1729_v57 = vpop.f32.mrb[6].mxu0  ;;  %912 = vst [vmem:[#allocation2 + $0x120] sm:$0xff] %v2257_v9  ;;  %v2260_v14 = vpop.f32.mrb[6].mxu1 }
 0x103   : > { %883 = vst [vmem:[#allocation2 + $0x38] sm:$0xff] %v1729_v57  ;;  %v638_v59 = vpop.f32.mrb[7].mxu0  ;;  %v1020_v3 = vmul.f32 %v1729_v57, %v1729_v57  ;;  %915 = vst [vmem:[#allocation2 + $0x138] sm:$0xff] %v2260_v14  ;;  %v2263_v16 = vpop.f32.mrb[7].mxu1 }
 0x104   : > { %v1080_v61 = vadd.f32 %v1079_v56, %v1017_v55  ;;  %881 = vst [vmem:[#allocation2 + $0x28] sm:$0xff] %v638_v59  ;;  %v945_v62 = vadd.f32 %v944_v54, %v638_v59  ;;  %v1018_v63 = vmul.f32 %v638_v59, %v638_v59  ;;  %913 = vst [vmem:[#allocation2 + $0x128] sm:$0xff] %v2263_v16 }
 0x106   : > { %v946_v1 = vadd.f32 %v1728_v49, %v945_v62  ;;  %v1081_v2 = vadd.f32 %v1080_v61, %v1018_v63 }
 0x108   : > { %v1082_v4 = vadd.f32 %v1081_v2, %v1019_v0  ;;  %v1732_v5 = vpop.f32.mrb[8].mxu0  ;;  %v947_v6 = vadd.f32 %v1729_v57, %v946_v1  ;;  %v2266_v27 = vpop.f32.mrb[8].mxu1 }
 0x109   : > { %886 = vst [vmem:[#allocation2 + $0x50] sm:$0xff] %v1732_v5  ;;  %v651_v8 = vpop.f32.mrb[9].mxu0  ;;  %v1023_v20 = vmul.f32 %v1732_v5, %v1732_v5  ;;  %918 = vst [vmem:[#allocation2 + $0x150] sm:$0xff] %v2266_v27  ;;  %v2269_v29 = vpop.f32.mrb[9].mxu1 }
 0x10a   : > { %884 = vst [vmem:[#allocation2 + $0x40] sm:$0xff] %v651_v8  ;;  %v948_v10 = vadd.f32 %v947_v6, %v651_v8  ;;  %v1021_v11 = vmul.f32 %v651_v8, %v651_v8  ;;  %v1083_v12 = vadd.f32 %v1082_v4, %v1020_v3  ;;  %v1733_v13 = vpop.f32.mrb[10].mxu0  ;;  %916 = vst [vmem:[#allocation2 + $0x140] sm:$0xff] %v2269_v29  ;;  %v2272_v34 = vpop.f32.mrb[10].mxu1 }
 0x10b   : > { %887 = vst [vmem:[#allocation2 + $0x58] sm:$0xff] %v1733_v13  ;;  %v654_v15 = vpop.f32.mrb[11].mxu0  ;;  %v1024_v23 = vmul.f32 %v1733_v13, %v1733_v13  ;;  %919 = vst [vmem:[#allocation2 + $0x158] sm:$0xff] %v2272_v34  ;;  %v2275_v36 = vpop.f32.mrb[11].mxu1 }
 0x10c   : > { %v1084_v17 = vadd.f32 %v1083_v12, %v1021_v11  ;;  %885 = vst [vmem:[#allocation2 + $0x48] sm:$0xff] %v654_v15  ;;  %v949_v18 = vadd.f32 %v948_v10, %v654_v15  ;;  %v1022_v19 = vmul.f32 %v654_v15, %v654_v15  ;;  %917 = vst [vmem:[#allocation2 + $0x148] sm:$0xff] %v2275_v36 }
 0x10e   : > { %v950_v21 = vadd.f32 %v1732_v5, %v949_v18  ;;  %v1085_v22 = vadd.f32 %v1084_v17, %v1022_v19 }
 0x110   : > { %v1086_v24 = vadd.f32 %v1085_v22, %v1023_v20  ;;  %v1736_v25 = vpop.f32.mrb[12].mxu0  ;;  %v951_v26 = vadd.f32 %v1733_v13, %v950_v21  ;;  %v2278_v47 = vpop.f32.mrb[12].mxu1 }
 0x111   : > { %890 = vst [vmem:[#allocation2 + $0x70] sm:$0xff] %v1736_v25  ;;  %v667_v28 = vpop.f32.mrb[13].mxu0  ;;  %v1027_v40 = vmul.f32 %v1736_v25, %v1736_v25  ;;  %922 = vst [vmem:[#allocation2 + $0x170] sm:$0xff] %v2278_v47  ;;  %v2281_v49 = vpop.f32.mrb[13].mxu1 }
 0x112   : > { %888 = vst [vmem:[#allocation2 + $0x60] sm:$0xff] %v667_v28  ;;  %v952_v30 = vadd.f32 %v951_v26, %v667_v28  ;;  %v1025_v31 = vmul.f32 %v667_v28, %v667_v28  ;;  %v1087_v32 = vadd.f32 %v1086_v24, %v1024_v23  ;;  %v1737_v33 = vpop.f32.mrb[14].mxu0  ;;  %920 = vst [vmem:[#allocation2 + $0x160] sm:$0xff] %v2281_v49  ;;  %v2284_v56 = vpop.f32.mrb[14].mxu1 }
 0x113   : > { %891 = vst [vmem:[#allocation2 + $0x78] sm:$0xff] %v1737_v33  ;;  %v670_v35 = vpop.f32.mrb[15].mxu0  ;;  %v1028_v43 = vmul.f32 %v1737_v33, %v1737_v33  ;;  %923 = vst [vmem:[#allocation2 + $0x178] sm:$0xff] %v2284_v56  ;;  %v2287_v59 = vpop.f32.mrb[15].mxu1 }
 0x114   : > { %v1088_v37 = vadd.f32 %v1087_v32, %v1025_v31  ;;  %889 = vst [vmem:[#allocation2 + $0x68] sm:$0xff] %v670_v35  ;;  %v953_v38 = vadd.f32 %v952_v30, %v670_v35  ;;  %v1026_v39 = vmul.f32 %v670_v35, %v670_v35  ;;  %921 = vst [vmem:[#allocation2 + $0x168] sm:$0xff] %v2287_v59 }
 0x116   : > { %v954_v41 = vadd.f32 %v1736_v25, %v953_v38  ;;  %v1089_v42 = vadd.f32 %v1088_v37, %v1026_v39 }
 0x118   : > { %v1090_v44 = vadd.f32 %v1089_v42, %v1027_v40  ;;  %v1740_v45 = vpop.f32.mrb[16].mxu0  ;;  %v955_v46 = vadd.f32 %v1737_v33, %v954_v41  ;;  %v2290_v8 = vpop.f32.mrb[16].mxu1 }
 0x119   : > { %894 = vst [vmem:[#allocation2 + $0x90] sm:$0xff] %v1740_v45  ;;  %v683_v48 = vpop.f32.mrb[17].mxu0  ;;  %v1031_v0 = vmul.f32 %v1740_v45, %v1740_v45  ;;  %926 = vst [vmem:[#allocation2 + $0x190] sm:$0xff] %v2290_v8  ;;  %v2293_v11 = vpop.f32.mrb[17].mxu1 }
 0x11a   : > { %892 = vst [vmem:[#allocation2 + $0x80] sm:$0xff] %v683_v48  ;;  %v956_v50 = vadd.f32 %v955_v46, %v683_v48  ;;  %v1029_v52 = vmul.f32 %v683_v48, %v683_v48  ;;  %v1091_v54 = vadd.f32 %v1090_v44, %v1028_v43  ;;  %v1741_v55 = vpop.f32.mrb[18].mxu0  ;;  %924 = vst [vmem:[#allocation2 + $0x180] sm:$0xff] %v2293_v11  ;;  %v2296_v18 = vpop.f32.mrb[18].mxu1 }
 0x11b   : > { %895 = vst [vmem:[#allocation2 + $0x98] sm:$0xff] %v1741_v55  ;;  %v686_v57 = vpop.f32.mrb[19].mxu0  ;;  %v1032_v3 = vmul.f32 %v1741_v55, %v1741_v55  ;;  %927 = vst [vmem:[#allocation2 + $0x198] sm:$0xff] %v2296_v18  ;;  %v2299_v20 = vpop.f32.mrb[19].mxu1 }
 0x11c   : > { %v1092_v61 = vadd.f32 %v1091_v54, %v1029_v52  ;;  %893 = vst [vmem:[#allocation2 + $0x88] sm:$0xff] %v686_v57  ;;  %v957_v62 = vadd.f32 %v956_v50, %v686_v57  ;;  %v1030_v63 = vmul.f32 %v686_v57, %v686_v57  ;;  %925 = vst [vmem:[#allocation2 + $0x188] sm:$0xff] %v2299_v20 }
 0x11e   : > { %v958_v1 = vadd.f32 %v1740_v45, %v957_v62  ;;  %v1093_v2 = vadd.f32 %v1092_v61, %v1030_v63 }
 0x120   : > { %v1094_v4 = vadd.f32 %v1093_v2, %v1031_v0  ;;  %v1744_v5 = vpop.f32.mrb[20].mxu0  ;;  %v959_v6 = vadd.f32 %v1741_v55, %v958_v1  ;;  %v2302_v33 = vpop.f32.mrb[20].mxu1 }
 0x121   : > { %898 = vst [vmem:[#allocation2 + $0xb0] sm:$0xff] %v1744_v5  ;;  %v699_v10 = vpop.f32.mrb[21].mxu0  ;;  %v1035_v24 = vmul.f32 %v1744_v5, %v1744_v5  ;;  %930 = vst [vmem:[#allocation2 + $0x1b0] sm:$0xff] %v2302_v33  ;;  %v2305_v37 = vpop.f32.mrb[21].mxu1 }
 0x122   : > { %896 = vst [vmem:[#allocation2 + $0xa0] sm:$0xff] %v699_v10  ;;  %v960_v12 = vadd.f32 %v959_v6, %v699_v10  ;;  %v1033_v13 = vmul.f32 %v699_v10, %v699_v10  ;;  %v1095_v15 = vadd.f32 %v1094_v4, %v1032_v3  ;;  %v1745_v17 = vpop.f32.mrb[22].mxu0  ;;  %928 = vst [vmem:[#allocation2 + $0x1a0] sm:$0xff] %v2305_v37  ;;  %v2308_v42 = vpop.f32.mrb[22].mxu1 }
 0x123   : > { %899 = vst [vmem:[#allocation2 + $0xb8] sm:$0xff] %v1745_v17  ;;  %v702_v19 = vpop.f32.mrb[23].mxu0  ;;  %v1036_v28 = vmul.f32 %v1745_v17, %v1745_v17  ;;  %931 = vst [vmem:[#allocation2 + $0x1b8] sm:$0xff] %v2308_v42  ;;  %v2311_v44 = vpop.f32.mrb[23].mxu1 }
 0x124   : > { %v1096_v21 = vadd.f32 %v1095_v15, %v1033_v13  ;;  %897 = vst [vmem:[#allocation2 + $0xa8] sm:$0xff] %v702_v19  ;;  %v961_v22 = vadd.f32 %v960_v12, %v702_v19  ;;  %v1034_v23 = vmul.f32 %v702_v19, %v702_v19  ;;  %929 = vst [vmem:[#allocation2 + $0x1a8] sm:$0xff] %v2311_v44 }
 0x126   : > { %v962_v25 = vadd.f32 %v1744_v5, %v961_v22  ;;  %v1097_v26 = vadd.f32 %v1096_v21, %v1034_v23 }
 0x128   : > { %v1098_v30 = vadd.f32 %v1097_v26, %v1035_v24  ;;  %v1748_v31 = vpop.f32.mrb[24].mxu0  ;;  %v963_v32 = vadd.f32 %v1745_v17, %v962_v25  ;;  %v2314_v63 = vpop.f32.mrb[24].mxu1  ;;  %v1045_v26 = vmul.f32 %v2245_v53, %v2245_v53 }
 0x129   : > { %902 = vst [vmem:[#allocation2 + $0xd0] sm:$0xff] %v1748_v31  ;;  %v715_v35 = vpop.f32.mrb[25].mxu0  ;;  %v1039_v50 = vmul.f32 %v1748_v31, %v1748_v31  ;;  %934 = vst [vmem:[#allocation2 + $0x1d0] sm:$0xff] %v2314_v63  ;;  %v2317_v1 = vpop.f32.mrb[25].mxu1 }
 0x12a   : > { %900 = vst [vmem:[#allocation2 + $0xc0] sm:$0xff] %v715_v35  ;;  %v964_v38 = vadd.f32 %v963_v32, %v715_v35  ;;  %v1037_v39 = vmul.f32 %v715_v35, %v715_v35  ;;  %v1099_v40 = vadd.f32 %v1098_v30, %v1036_v28  ;;  %v1749_v41 = vpop.f32.mrb[26].mxu0  ;;  %932 = vst [vmem:[#allocation2 + $0x1c0] sm:$0xff] %v2317_v1  ;;  %v2320_v6 = vpop.f32.mrb[26].mxu1 }
 0x12b   : > { %903 = vst [vmem:[#allocation2 + $0xd8] sm:$0xff] %v1749_v41  ;;  %v718_v43 = vpop.f32.mrb[27].mxu0  ;;  %v1040_v55 = vmul.f32 %v1749_v41, %v1749_v41  ;;  %935 = vst [vmem:[#allocation2 + $0x1d8] sm:$0xff] %v2320_v6  ;;  %v2323_v12 = vpop.f32.mrb[27].mxu1 }
 0x12c   : > { %v1100_v45 = vadd.f32 %v1099_v40, %v1037_v39  ;;  %901 = vst [vmem:[#allocation2 + $0xc8] sm:$0xff] %v718_v43  ;;  %v965_v46 = vadd.f32 %v964_v38, %v718_v43  ;;  %v1038_v48 = vmul.f32 %v718_v43, %v718_v43  ;;  %933 = vst [vmem:[#allocation2 + $0x1c8] sm:$0xff] %v2323_v12 }
 0x12e   : > { %v966_v52 = vadd.f32 %v1748_v31, %v965_v46  ;;  %v1101_v54 = vadd.f32 %v1100_v45, %v1038_v48  ;;  %v1048_v46 = vmul.f32 %v2248_v58, %v2248_v58 }
 0x130   : > { %v1102_v57 = vadd.f32 %v1101_v54, %v1039_v50  ;;  %v1752_v61 = vpop.f32.mrb[28].mxu0  ;;  %v967_v62 = vadd.f32 %v1749_v41, %v966_v52  ;;  %v2328_v28 = vpop.f32.mrb[28].mxu1  ;;  %v1046_v41 = vmul.f32 %v2251_v60, %v2251_v60  ;;  %v1049_v52 = vmul.f32 %v2257_v9, %v2257_v9 }
 0x131   : > { %906 = vst [vmem:[#allocation2 + $0xf0] sm:$0xff] %v1752_v61  ;;  %v731_v0 = vpop.f32.mrb[29].mxu0  ;;  %v1043_v19 = vmul.f32 %v1752_v61, %v1752_v61  ;;  %938 = vst [vmem:[#allocation2 + $0x1f0] sm:$0xff] %v2328_v28  ;;  %v2331_v30 = vpop.f32.mrb[29].mxu1 }
 0x132   : > { %904 = vst [vmem:[#allocation2 + $0xe0] sm:$0xff] %v731_v0  ;;  %v968_v2 = vadd.f32 %v967_v62, %v731_v0  ;;  %v1041_v3 = vmul.f32 %v731_v0, %v731_v0  ;;  %v1103_v4 = vadd.f32 %v1102_v57, %v1040_v55  ;;  %v1753_v5 = vpop.f32.mrb[30].mxu0  ;;  %936 = vst [vmem:[#allocation2 + $0x1e0] sm:$0xff] %v2331_v30  ;;  %v2335_v35 = vpop.f32.mrb[30].mxu1 }
 0x133   : > { %907 = vst [vmem:[#allocation2 + $0xf8] sm:$0xff] %v1753_v5  ;;  %v734_v10 = vpop.f32.mrb[31].mxu0  ;;  %v1044_v23 = vmul.f32 %v1753_v5, %v1753_v5  ;;  %939 = vst [vmem:[#allocation2 + $0x1f8] sm:$0xff] %v2335_v35  ;;  %v2338_v38 = vpop.f32.mrb[31].mxu1 }
 0x134   : > { %v1104_v13 = vadd.f32 %v1103_v4, %v1041_v3  ;;  %905 = vst [vmem:[#allocation2 + $0xe8] sm:$0xff] %v734_v10  ;;  %v969_v15 = vadd.f32 %v968_v2, %v734_v10  ;;  %v1042_v17 = vmul.f32 %v734_v10, %v734_v10  ;;  %937 = vst [vmem:[#allocation2 + $0x1e8] sm:$0xff] %v2338_v38 }
 0x136   : > { %v970_v21 = vadd.f32 %v1752_v61, %v969_v15  ;;  %v1105_v22 = vadd.f32 %v1104_v13, %v1042_v17  ;;  %v1050_v61 = vmul.f32 %v2263_v16, %v2263_v16  ;;  %v1054_v13 = vmul.f32 %v2275_v36, %v2275_v36 }
 0x138   : > { %v1106_v24 = vadd.f32 %v1105_v22, %v1043_v19  ;;  %v971_v25 = vadd.f32 %v1753_v5, %v970_v21 }
 0x13a   : > { %v972_v31 = vadd.f32 %v971_v25, %v2245_v53  ;;  %v1107_v32 = vadd.f32 %v1106_v24, %v1044_v23  ;;  %v1047_v53 = vmul.f32 %v2242_v51, %v2242_v51  ;;  %v1058_v25 = vmul.f32 %v2287_v59, %v2287_v59 }
 0x13c   : > { %v1108_v39 = vadd.f32 %v1107_v32, %v1045_v26  ;;  %v973_v40 = vadd.f32 %v972_v31, %v2251_v60 }
 0x13e   : > { %v974_v43 = vadd.f32 %v2242_v51, %v973_v40  ;;  %v1109_v45 = vadd.f32 %v1108_v39, %v1046_v41  ;;  %v1051_v51 = vmul.f32 %v2254_v7, %v2254_v7 }
 0x140   : > { %v1110_v48 = vadd.f32 %v1109_v45, %v1047_v53  ;;  %v975_v50 = vadd.f32 %v2248_v58, %v974_v43  ;;  %v1052_v58 = vmul.f32 %v2260_v14, %v2260_v14  ;;  %v1062_v43 = vmul.f32 %v2299_v20, %v2299_v20 }
 0x142   : > { %v976_v54 = vadd.f32 %v975_v50, %v2257_v9  ;;  %v1111_v60 = vadd.f32 %v1110_v48, %v1048_v46  ;;  %v1053_v9 = vmul.f32 %v2269_v29, %v2269_v29 }
 0x144   : > { %v1112_v55 = vadd.f32 %v1111_v60, %v1049_v52  ;;  %v977_v57 = vadd.f32 %v976_v54, %v2263_v16 }
 0x146   : > { %v978_v62 = vadd.f32 %v2254_v7, %v977_v57  ;;  %v1113_v0 = vadd.f32 %v1112_v55, %v1050_v61  ;;  %v1055_v7 = vmul.f32 %v2266_v27, %v2266_v27  ;;  %v1066_v55 = vmul.f32 %v2311_v44, %v2311_v44 }
 0x148   : > { %v1114_v2 = vadd.f32 %v1113_v0, %v1051_v51  ;;  %v979_v3 = vadd.f32 %v2260_v14, %v978_v62  ;;  %v1056_v14 = vmul.f32 %v2272_v34, %v2272_v34 }
 0x14a   : > { %v980_v4 = vadd.f32 %v979_v3, %v2269_v29  ;;  %v1115_v5 = vadd.f32 %v1114_v2, %v1052_v58  ;;  %v1057_v29 = vmul.f32 %v2281_v49, %v2281_v49  ;;  %v1070_v3 = vmul.f32 %v2323_v12, %v2323_v12 }
 0x14c   : > { %v1116_v10 = vadd.f32 %v1115_v5, %v1053_v9  ;;  %v981_v16 = vadd.f32 %v980_v4, %v2275_v36 }
 0x14e   : > { %v982_v15 = vadd.f32 %v2266_v27, %v981_v16  ;;  %v1117_v17 = vadd.f32 %v1116_v10, %v1054_v13  ;;  %v1059_v27 = vmul.f32 %v2278_v47, %v2278_v47 }
 0x150   : > { %v1118_v19 = vadd.f32 %v1117_v17, %v1055_v7  ;;  %v983_v21 = vadd.f32 %v2272_v34, %v982_v15  ;;  %v1060_v34 = vmul.f32 %v2284_v56, %v2284_v56  ;;  %v1074_v15 = vmul.f32 %v2338_v38, %v2338_v38 }
 0x152   : > { %v984_v22 = vadd.f32 %v983_v21, %v2281_v49  ;;  %v1119_v23 = vadd.f32 %v1118_v19, %v1056_v14  ;;  %v1061_v49 = vmul.f32 %v2293_v11, %v2293_v11 }
 0x154   : > { %v1120_v24 = vadd.f32 %v1119_v23, %v1057_v29  ;;  %v985_v36 = vadd.f32 %v984_v22, %v2287_v59 }
 0x156   : > { %v986_v26 = vadd.f32 %v2278_v47, %v985_v36  ;;  %v1121_v31 = vadd.f32 %v1120_v24, %v1058_v25  ;;  %v1063_v47 = vmul.f32 %v2290_v8, %v2290_v8 }
 0x158   : > { %v1122_v32 = vadd.f32 %v1121_v31, %v1059_v27  ;;  %v987_v39 = vadd.f32 %v2284_v56, %v986_v26  ;;  %v1064_v56 = vmul.f32 %v2296_v18, %v2296_v18  ;;  %v940_v31 = vld [vmem:[#allocation3] sm:$0x1] }
 0x15a   : > { %v988_v40 = vadd.f32 %v987_v39, %v2293_v11  ;;  %v1123_v41 = vadd.f32 %v1122_v32, %v1060_v34  ;;  %v1065_v11 = vmul.f32 %v2305_v37, %v2305_v37  ;;  %v1012_v32 = vld [vmem:[#allocation4] sm:$0x1] }
 0x15c   : > { %v1124_v53 = vadd.f32 %v1123_v41, %v1061_v49  ;;  %v989_v59 = vadd.f32 %v988_v40, %v2299_v20 }
 0x15e   : > { %v990_v45 = vadd.f32 %v2290_v8, %v989_v59  ;;  %v1125_v46 = vadd.f32 %v1124_v53, %v1062_v43  ;;  %v1067_v8 = vmul.f32 %v2302_v33, %v2302_v33 }
 0x160   : > { %v1126_v48 = vadd.f32 %v1125_v46, %v1063_v47  ;;  %v991_v50 = vadd.f32 %v2296_v18, %v990_v45  ;;  %v1068_v18 = vmul.f32 %v2308_v42, %v2308_v42 }
 0x162   : > { %v992_v52 = vadd.f32 %v991_v50, %v2305_v37  ;;  %v1127_v54 = vadd.f32 %v1126_v48, %v1064_v56  ;;  %v1069_v37 = vmul.f32 %v2317_v1, %v2317_v1 }
 0x164   : > { %v1128_v60 = vadd.f32 %v1127_v54, %v1065_v11  ;;  %v993_v20 = vadd.f32 %v992_v52, %v2311_v44 }
 0x166   : > { %v994_v57 = vadd.f32 %v2302_v33, %v993_v20  ;;  %v1129_v61 = vadd.f32 %v1128_v60, %v1066_v55  ;;  %v1071_v33 = vmul.f32 %v2314_v63, %v2314_v63 }
 0x168   : > { %v1130_v51 = vadd.f32 %v1129_v61, %v1067_v8  ;;  %v995_v62 = vadd.f32 %v2308_v42, %v994_v57  ;;  %v1072_v42 = vmul.f32 %v2320_v6, %v2320_v6 }
 0x16a   : > { %v996_v0 = vadd.f32 %v995_v62, %v2317_v1  ;;  %v1131_v58 = vadd.f32 %v1130_v51, %v1068_v18  ;;  %v1073_v1 = vmul.f32 %v2331_v30, %v2331_v30 }
 0x16c   : > { %v1132_v2 = vadd.f32 %v1131_v58, %v1069_v37  ;;  %v997_v44 = vadd.f32 %v996_v0, %v2323_v12 }
 0x16e   : > { %v998_v9 = vadd.f32 %v2314_v63, %v997_v44  ;;  %v1133_v4 = vadd.f32 %v1132_v2, %v1070_v3  ;;  %v1075_v63 = vmul.f32 %v2328_v28, %v2328_v28 }
 0x170   : > { %v1134_v5 = vadd.f32 %v1133_v4, %v1071_v33  ;;  %v999_v10 = vadd.f32 %v2320_v6, %v998_v9  ;;  %v1076_v6 = vmul.f32 %v2335_v35, %v2335_v35 }
 0x172   : > { %v1000_v16 = vadd.f32 %v999_v10, %v2331_v30  ;;  %v1135_v13 = vadd.f32 %v1134_v5, %v1072_v42 }
 0x174   : > { %v1136_v7 = vadd.f32 %v1135_v13, %v1073_v1  ;;  %v1001_v12 = vadd.f32 %v1000_v16, %v2338_v38 }
 0x176   : > { %v1002_v17 = vadd.f32 %v2328_v28, %v1001_v12  ;;  %v1137_v14 = vadd.f32 %v1136_v7, %v1074_v15 }
 0x178   : > { %v1003_v19 = vadd.f32 %v2335_v35, %v1002_v17  ;;  %v1138_v21 = vadd.f32 %v1137_v14, %v1075_v63 }
 0x17a   : > { %v1004_v30 = vrot.slane %v1003_v19, 4  ;;  %v1139_v29 = vadd.f32 %v1138_v21, %v1076_v6 }
 0x17c   : > { %v1005_v22 = vadd.f32 %v1004_v30, %v1003_v19  ;;  %v1140_v23 = vrot.slane %v1139_v29, 4 }
 0x17e   : > { %v1006_v24 = vrot.slane %v1005_v22, 2  ;;  %v1141_v36 = vadd.f32 %v1140_v23, %v1139_v29 }
 0x180   : > { %v1007_v25 = vadd.f32 %v1006_v24, %v1005_v22  ;;  %v1142_v38 = vrot.slane %v1141_v36, 2 }
 0x182   : > { %v1008_v27 = vrot.slane %v1007_v25, 1  ;;  %v1143_v26 = vadd.f32 %v1142_v38, %v1141_v36 }
 0x184   : > { %v1009_v34 = vadd.f32 %v1008_v27, %v1007_v25  ;;  %v1144_v28 = vrot.slane %v1143_v26, 1 }
 0x186   : > { %v1010_v39 = vadd.f32 %v1009_v34, %v940_v31  ;;  %v1145_v49 = vadd.f32 %v1144_v28, %v1143_v26 }
 0x188   : > { %1011 = vst [vmem:[#allocation3] sm:$0x1] %v1010_v39  ;;  %v1146_v40 = vadd.f32 %v1145_v49, %v1012_v32 }
 0x18a   : > { %1147 = vst [vmem:[#allocation4] sm:$0x1] %v1146_v40 }
 0x18b PF: > { %p1148_p6 = scmp.eq.s32.totalorder %s2042_s15, 1 }
 0x18c   : > { %v1161_v46 = vld [vmem:[%s2612_s2] sm:$0x1] (%p1148_p6) }
 0x18d   : > { %1152 = sbr.rel (!%p1148_p6) target bundleno = 426 (0x1aa), region = 48  ;;  %v1164_v50 = vld [vmem:[%s2613_s3] sm:$0x1] (%p1148_p6) }
 0x18f   : > { %v1153_v35 = vld [vmem:[#allocation3] sm:$0x1] (%p1148_p6) }
 0x190   : > { %v1154_v53 = vmul.f32 (%p1148_p6), 0.001953125, %v1153_v35 }
 0x191   : > { %v1155_v41 = vld [vmem:[#allocation4] sm:$0x1] (%p1148_p6) }
 0x192   : > { %v1156_v59 = vmul.f32 (%p1148_p6), 0.001953125, %v1155_v41  ;;  %v1157_v43 = vmul.f32 (%p1148_p6), %v1154_v53, %v1154_v53 }
 0x194   : > { %v1158_v47 = vsub.f32 %v1156_v59, %v1157_v43 }
 0x196   : > { %v1159_v45 = vadd.f32 1e-05, %v1158_v47 }
 0x198   : > { %1868 = vrsqrt.f32 %v1159_v45 }
 0x1a2   : > { %v1869_v56 = vpop.eup %1868 }
 0x1a3   : > { %v1162_v48 = vmul.f32 %v1869_v56, %v1161_v46 }
 0x1a5   : > { %1163 = vst [vmem:[#allocation5] sm:$0x1] %v1162_v48  ;;  %v1165_v11 = vmul.f32 %v1162_v48, %v1154_v53 }
 0x1a7   : > { %v1166_v52 = vsub.f32 %v1164_v50, %v1165_v11 }
 0x1a9   : > { %1167 = vst [vmem:[#allocation6] sm:$0x1] %v1166_v52 }
 0x1aa PF: > { %p1672_p7 = scmp.ne.s32.totalorder %s2042_s15, 1 }
 0x1ab   : > { %v1173_v54 = vld [vmem:[#allocation2] sm:$0xff] (!%p1672_p7)  ;;  %v1174_v8 = vld [vmem:[#allocation2 + $0x8] sm:$0xff] (!%p1672_p7)  ;;  %v1175_v57 = vld [vmem:[#allocation2 + $0x10] sm:$0xff] (!%p1672_p7) }
 0x1ac   : > { %1170 = sbr.rel (%p1672_p7) target bundleno = 510 (0x1fe), region = 52  ;;  %v2442_v60 = vld [vmem:[#allocation5] ss:$0 sm:$0xff] (!%p1672_p7)  ;;  %v1176_v61 = vld [vmem:[#allocation2 + $0x18] sm:$0xff] (!%p1672_p7)  ;;  %v1178_v0 = vld [vmem:[#allocation2 + $0x28] sm:$0xff] (!%p1672_p7) }
 0x1ad   : > { %v1244_v55 = vmul.f32 (!%p1672_p7), %v2442_v60, %v1173_v54  ;;  %v1245_v18 = vmul.f32 (!%p1672_p7), %v2442_v60, %v1174_v8  ;;  %v1246_v51 = vmul.f32 (!%p1672_p7), %v2442_v60, %v1175_v57  ;;  %v1247_v62 = vmul.f32 (!%p1672_p7), %v2442_v60, %v1176_v61  ;;  %v1177_v37 = vld [vmem:[#allocation2 + $0x20] sm:$0xff] (!%p1672_p7)  ;;  %v1179_v58 = vld [vmem:[#allocation2 + $0x30] sm:$0xff] (!%p1672_p7)  ;;  %v1180_v9 = vld [vmem:[#allocation2 + $0x38] sm:$0xff] (!%p1672_p7) }
 0x1ae   : > { %v1248_v44 = vmul.f32 (!%p1672_p7), %v2442_v60, %v1177_v37  ;;  %v1249_v3 = vmul.f32 (!%p1672_p7), %v2442_v60, %v1178_v0  ;;  %v1250_v33 = vmul.f32 (!%p1672_p7), %v2442_v60, %v1179_v58  ;;  %v1181_v4 = vld [vmem:[#allocation2 + $0x40] sm:$0xff] (!%p1672_p7)  ;;  %v1182_v42 = vld [vmem:[#allocation2 + $0x48] sm:$0xff] (!%p1672_p7)  ;;  %v1251_v16 = vmul.f32 (!%p1672_p7), %v2442_v60, %v1180_v9  ;;  %v1183_v13 = vld [vmem:[#allocation2 + $0x50] sm:$0xff] (!%p1672_p7) }
 0x1af   : > { %v1184_v12 = vld [vmem:[#allocation2 + $0x58] sm:$0xff] (!%p1672_p7)  ;;  %v1252_v63 = vmul.f32 (!%p1672_p7), %v2442_v60, %v1181_v4  ;;  %v1253_v17 = vmul.f32 (!%p1672_p7), %v2442_v60, %v1182_v42  ;;  %v1185_v14 = vld [vmem:[#allocation2 + $0x60] sm:$0xff] (!%p1672_p7)  ;;  %v1254_v19 = vmul.f32 (!%p1672_p7), %v2442_v60, %v1183_v13  ;;  %v1186_v21 = vld [vmem:[#allocation2 + $0x68] sm:$0xff] (!%p1672_p7) }
 0x1b0   : > { %v2444_v20 = vld [vmem:[#allocation6] ss:$0 sm:$0xff] (!%p1672_p7)  ;;  %v1255_v29 = vmul.f32 (!%p1672_p7), %v2442_v60, %v1184_v12  ;;  %v1187_v22 = vld [vmem:[#allocation2 + $0x70] sm:$0xff] (!%p1672_p7)  ;;  %v1256_v24 = vmul.f32 (!%p1672_p7), %v2442_v60, %v1185_v14  ;;  %v1188_v36 = vld [vmem:[#allocation2 + $0x78] sm:$0xff] (!%p1672_p7)  ;;  %v1257_v38 = vmul.f32 (!%p1672_p7), %v2442_v60, %v1186_v21 }
 0x1b1   : > { %v1315_v2 = vadd.f32 (!%p1672_p7), %v2444_v20, %v1244_v55  ;;  %v1316_v5 = vadd.f32 (!%p1672_p7), %v2444_v20, %v1245_v18  ;;  %v1317_v10 = vadd.f32 (!%p1672_p7), %v2444_v20, %v1246_v51  ;;  %v1318_v1 = vadd.f32 (!%p1672_p7), %v2444_v20, %v1247_v62  ;;  %v1189_v27 = vld [vmem:[#allocation2 + $0x80] sm:$0xff] (!%p1672_p7)  ;;  %v1190_v34 = vld [vmem:[#allocation2 + $0x88] sm:$0xff] (!%p1672_p7)  ;;  %v1191_v39 = vld [vmem:[#allocation2 + $0x90] sm:$0xff] (!%p1672_p7) }
 0x1b2   : > { %v1319_v7 = vadd.f32 (!%p1672_p7), %v2444_v20, %v1248_v44  ;;  %v1320_v15 = vadd.f32 (!%p1672_p7), %v2444_v20, %v1249_v3  ;;  %v1321_v6 = vadd.f32 (!%p1672_p7), %v2444_v20, %v1250_v33  ;;  %v1322_v30 = vadd.f32 (!%p1672_p7), %v2444_v20, %v1251_v16  ;;  %v1192_v35 = vld [vmem:[#allocation2 + $0x98] sm:$0xff] (!%p1672_p7)  ;;  %v1193_v59 = vld [vmem:[#allocation2 + $0xa0] sm:$0xff] (!%p1672_p7)  ;;  %v1194_v46 = vld [vmem:[#allocation2 + $0xa8] sm:$0xff] (!%p1672_p7) }
 0x1b3   : > { %1870 = vtanh.f32 %v1315_v2  ;;  %v1323_v23 = vadd.f32 %v2444_v20, %v1252_v63  ;;  %v1324_v25 = vadd.f32 %v2444_v20, %v1253_v17  ;;  %v1325_v26 = vadd.f32 %v2444_v20, %v1254_v19  ;;  %v1195_v11 = vld [vmem:[#allocation2 + $0xb0] sm:$0xff]  ;;  %v1196_v8 = vld [vmem:[#allocation2 + $0xb8] sm:$0xff]  ;;  %v1197_v51 = vld [vmem:[#allocation2 + $0xc0] sm:$0xff] }
 0x1b4   : > { %1872 = vtanh.f32 %v1316_v5  ;;  %v1258_v31 = vmul.f32 %v2442_v60, %v1187_v22  ;;  %v1326_v28 = vadd.f32 %v2444_v20, %v1255_v29  ;;  %v1259_v32 = vmul.f32 %v2442_v60, %v1188_v36  ;;  %v1198_v58 = vld [vmem:[#allocation2 + $0xc8] sm:$0xff]  ;;  %v1199_v33 = vld [vmem:[#allocation2 + $0xd0] sm:$0xff]  ;;  %v1200_v5 = vld [vmem:[#allocation2 + $0xd8] sm:$0xff] }
 0x1b5   : > { %1874 = vtanh.f32 %v1317_v10  ;;  %v1327_v49 = vadd.f32 %v2444_v20, %v1256_v24  ;;  %v1260_v40 = vmul.f32 %v2442_v60, %v1189_v27  ;;  %v1328_v41 = vadd.f32 %v2444_v20, %v1257_v38  ;;  %v1201_v13 = vld [vmem:[#allocation2 + $0xe0] sm:$0xff]  ;;  %v1202_v63 = vld [vmem:[#allocation2 + $0xe8] sm:$0xff]  ;;  %v1203_v19 = vld [vmem:[#allocation2 + $0xf0] sm:$0xff] }
 0x1b6   : > { %1876 = vtanh.f32 %v1318_v1  ;;  %v1261_v53 = vmul.f32 %v2442_v60, %v1190_v34  ;;  %v1329_v47 = vadd.f32 %v2444_v20, %v1258_v31  ;;  %v1262_v45 = vmul.f32 %v2442_v60, %v1191_v39  ;;  %v1204_v22 = vld [vmem:[#allocation2 + $0xf8] sm:$0xff]  ;;  %v1206_v31 = vld [vmem:[#allocation2 + $0x108] sm:$0xff]  ;;  %v1207_v39 = vld [vmem:[#allocation2 + $0x110] sm:$0xff] }
 0x1b7   : > { %1878 = vtanh.f32 %v1319_v7  ;;  %v1330_v48 = vadd.f32 %v2444_v20, %v1259_v32  ;;  %v1263_v50 = vmul.f32 %v2442_v60, %v1192_v35  ;;  %v1331_v54 = vadd.f32 %v2444_v20, %v1260_v40 }
 0x1b8   : > { %1880 = vtanh.f32 %v1320_v15  ;;  %v1264_v55 = vmul.f32 %v2442_v60, %v1193_v59  ;;  %v1332_v61 = vadd.f32 %v2444_v20, %v1261_v53  ;;  %v1265_v18 = vmul.f32 %v2442_v60, %v1194_v46 }
 0x1b9   : > { %1882 = vtanh.f32 %v1321_v6  ;;  %v1333_v37 = vadd.f32 %v2444_v20, %v1262_v45  ;;  %v1266_v0 = vmul.f32 %v2442_v60, %v1195_v11  ;;  %v1334_v44 = vadd.f32 %v2444_v20, %v1263_v50 }
 0x1ba   : > { %1884 = vtanh.f32 %v1322_v30  ;;  %v1267_v3 = vmul.f32 %v2442_v60, %v1196_v8  ;;  %v1335_v4 = vadd.f32 %v2444_v20, %v1264_v55  ;;  %v1268_v42 = vmul.f32 %v2442_v60, %v1197_v51 }
 0x1bb   : > { %1886 = vtanh.f32 %v1323_v23  ;;  %v1336_v1 = vadd.f32 %v2444_v20, %v1265_v18  ;;  %v1269_v16 = vmul.f32 %v2442_v60, %v1198_v58  ;;  %v1337_v12 = vadd.f32 %v2444_v20, %v1266_v0 }
 0x1bc   : > { %1888 = vtanh.f32 %v1324_v25  ;;  %v1270_v15 = vmul.f32 %v2442_v60, %v1199_v33  ;;  %v1338_v14 = vadd.f32 %v2444_v20, %v1267_v3  ;;  %v1271_v6 = vmul.f32 %v2442_v60, %v1200_v5  ;;  %v1205_v25 = vld [vmem:[#allocation2 + $0x100] sm:$0xff] }
 0x1bd   : > { %v1871_v43 = vpop.eup %1870  ;;  %1890 = vtanh.f32 %v1325_v26  ;;  %v1339_v30 = vadd.f32 %v2444_v20, %v1268_v42  ;;  %v1272_v29 = vmul.f32 %v2442_v60, %v1201_v13  ;;  %v1340_v24 = vadd.f32 %v2444_v20, %v1269_v16 }
 0x1be   : > { %v1873_v56 = vpop.eup %1872  ;;  %1443 = vst [vmem:[#allocation7] sm:$0xff] %v1871_v43  ;;  %1892 = vtanh.f32 %v1326_v28  ;;  %v1273_v36 = vmul.f32 %v2442_v60, %v1202_v63  ;;  %v1341_v27 = vadd.f32 %v2444_v20, %v1270_v15  ;;  %v1274_v26 = vmul.f32 %v2442_v60, %v1203_v19 }
 0x1bf   : > { %v1875_v52 = vpop.eup %1874  ;;  %1444 = vst [vmem:[#allocation7 + $0x8] sm:$0xff] %v1873_v56  ;;  %1894 = vtanh.f32 %v1327_v49  ;;  %v1342_v28 = vadd.f32 %v2444_v20, %v1271_v6  ;;  %v1275_v32 = vmul.f32 %v2442_v60, %v1204_v22  ;;  %v1343_v40 = vadd.f32 %v2444_v20, %v1272_v29 }
 0x1c0   : > { %v1877_v57 = vpop.eup %1876  ;;  %1445 = vst [vmem:[#allocation7 + $0x10] sm:$0xff] %v1875_v52  ;;  %1896 = vtanh.f32 %v1328_v41  ;;  %v1276_v35 = vmul.f32 %v2442_v60, %v1205_v25  ;;  %v1208_v41 = vld [vmem:[#allocation2 + $0x118] sm:$0xff]  ;;  %v1344_v59 = vadd.f32 %v2444_v20, %v1273_v36  ;;  %v1277_v43 = vmul.f32 %v2442_v60, %v1206_v31 }
 0x1c1   : > { %v1879_v62 = vpop.eup %1878  ;;  %1446 = vst [vmem:[#allocation7 + $0x18] sm:$0xff] %v1877_v57  ;;  %1898 = vtanh.f32 %v1329_v47  ;;  %v1209_v47 = vld [vmem:[#allocation2 + $0x120] sm:$0xff]  ;;  %v1345_v46 = vadd.f32 %v2444_v20, %v1274_v26  ;;  %v1278_v56 = vmul.f32 %v2442_v60, %v1207_v39  ;;  %v1346_v11 = vadd.f32 %v2444_v20, %v1275_v32 }
 0x1c2   : > { %v1881_v2 = vpop.eup %1880  ;;  %1447 = vst [vmem:[#allocation7 + $0x20] sm:$0xff] %v1879_v62  ;;  %1900 = vtanh.f32 %v1330_v48  ;;  %v1210_v48 = vld [vmem:[#allocation2 + $0x128] sm:$0xff]  ;;  %v1279_v52 = vmul.f32 %v2442_v60, %v1208_v41  ;;  %v1347_v8 = vadd.f32 %v2444_v20, %v1276_v35  ;;  %v1280_v57 = vmul.f32 %v2442_v60, %v1209_v47 }
 0x1c3   : > { %v1883_v9 = vpop.eup %1882  ;;  %1448 = vst [vmem:[#allocation7 + $0x28] sm:$0xff] %v1881_v2  ;;  %1902 = vtanh.f32 %v1331_v54  ;;  %v1211_v54 = vld [vmem:[#allocation2 + $0x130] sm:$0xff]  ;;  %v1348_v51 = vadd.f32 %v2444_v20, %v1277_v43  ;;  %v1281_v62 = vmul.f32 %v2442_v60, %v1210_v48  ;;  %v1349_v58 = vadd.f32 %v2444_v20, %v1278_v56 }
 0x1c4   : > { %v1885_v10 = vpop.eup %1884  ;;  %1449 = vst [vmem:[#allocation7 + $0x30] sm:$0xff] %v1883_v9  ;;  %1904 = vtanh.f32 %v1332_v61  ;;  %v1212_v61 = vld [vmem:[#allocation2 + $0x138] sm:$0xff]  ;;  %v1282_v2 = vmul.f32 %v2442_v60, %v1211_v54  ;;  %v1350_v33 = vadd.f32 %v2444_v20, %v1279_v52  ;;  %v1351_v5 = vadd.f32 %v2444_v20, %v1280_v57 }
 0x1c5   : > { %v1887_v7 = vpop.eup %1886  ;;  %1450 = vst [vmem:[#allocation7 + $0x38] sm:$0xff] %v1885_v10  ;;  %1906 = vtanh.f32 %v1333_v37  ;;  %v1213_v37 = vld [vmem:[#allocation2 + $0x140] sm:$0xff]  ;;  %v1283_v9 = vmul.f32 %v2442_v60, %v1212_v61  ;;  %v1352_v13 = vadd.f32 %v2444_v20, %v1281_v62 }
 0x1c6   : > { %v1889_v17 = vpop.eup %1888  ;;  %1451 = vst [vmem:[#allocation7 + $0x40] sm:$0xff] %v1887_v7  ;;  %1908 = vtanh.f32 %v1334_v44  ;;  %v1214_v44 = vld [vmem:[#allocation2 + $0x148] sm:$0xff]  ;;  %v1284_v10 = vmul.f32 %v2442_v60, %v1213_v37  ;;  %v1353_v63 = vadd.f32 %v2444_v20, %v1282_v2 }
 0x1c7   : > { %v1891_v21 = vpop.eup %1890  ;;  %1452 = vst [vmem:[#allocation7 + $0x48] sm:$0xff] %v1889_v17  ;;  %1910 = vtanh.f32 %v1335_v4  ;;  %v1215_v4 = vld [vmem:[#allocation2 + $0x150] sm:$0xff]  ;;  %v1285_v7 = vmul.f32 %v2442_v60, %v1214_v44  ;;  %v1354_v19 = vadd.f32 %v2444_v20, %v1283_v9 }
 0x1c8   : > { %v1893_v23 = vpop.eup %1892  ;;  %1453 = vst [vmem:[#allocation7 + $0x50] sm:$0xff] %v1891_v21  ;;  %1912 = vtanh.f32 %v1336_v1  ;;  %v1216_v1 = vld [vmem:[#allocation2 + $0x158] sm:$0xff]  ;;  %v1286_v17 = vmul.f32 %v2442_v60, %v1215_v4  ;;  %v1355_v22 = vadd.f32 %v2444_v20, %v1284_v10 }
 0x1c9   : > { %v1895_v38 = vpop.eup %1894  ;;  %1454 = vst [vmem:[#allocation7 + $0x58] sm:$0xff] %v1893_v23  ;;  %1914 = vtanh.f32 %v1337_v12  ;;  %v1217_v12 = vld [vmem:[#allocation2 + $0x160] sm:$0xff]  ;;  %v1287_v21 = vmul.f32 %v2442_v60, %v1216_v1  ;;  %v1356_v25 = vadd.f32 %v2444_v20, %v1285_v7 }
 0x1ca   : > { %v1897_v34 = vpop.eup %1896  ;;  %1455 = vst [vmem:[#allocation7 + $0x60] sm:$0xff] %v1895_v38  ;;  %1916 = vtanh.f32 %v1338_v14  ;;  %v1218_v14 = vld [vmem:[#allocation2 + $0x168] sm:$0xff]  ;;  %v1288_v23 = vmul.f32 %v2442_v60, %v1217_v12  ;;  %v1357_v31 = vadd.f32 %v2444_v20, %v1286_v17 }
 0x1cb   : > { %v1899_v49 = vpop.eup %1898  ;;  %1456 = vst [vmem:[#allocation7 + $0x68] sm:$0xff] %v1897_v34  ;;  %1918 = vtanh.f32 %v1339_v30  ;;  %v1219_v30 = vld [vmem:[#allocation2 + $0x170] sm:$0xff]  ;;  %v1289_v38 = vmul.f32 %v2442_v60, %v1218_v14  ;;  %v1358_v39 = vadd.f32 %v2444_v20, %v1287_v21 }
 0x1cc   : > { %v1901_v53 = vpop.eup %1900  ;;  %1457 = vst [vmem:[#allocation7 + $0x70] sm:$0xff] %v1899_v49  ;;  %1920 = vtanh.f32 %v1340_v24  ;;  %v1220_v24 = vld [vmem:[#allocation2 + $0x178] sm:$0xff]  ;;  %v1290_v34 = vmul.f32 %v2442_v60, %v1219_v30  ;;  %v1359_v41 = vadd.f32 %v2444_v20, %v1288_v23 }
 0x1cd   : > { %v1903_v45 = vpop.eup %1902  ;;  %1458 = vst [vmem:[#allocation7 + $0x78] sm:$0xff] %v1901_v53  ;;  %1922 = vtanh.f32 %v1341_v27  ;;  %v1221_v27 = vld [vmem:[#allocation2 + $0x180] sm:$0xff]  ;;  %v1291_v49 = vmul.f32 %v2442_v60, %v1220_v24  ;;  %v1360_v47 = vadd.f32 %v2444_v20, %v1289_v38 }
 0x1ce   : > { %v1905_v50 = vpop.eup %1904  ;;  %1459 = vst [vmem:[#allocation7 + $0x80] sm:$0xff] %v1903_v45  ;;  %1924 = vtanh.f32 %v1342_v28  ;;  %v1222_v28 = vld [vmem:[#allocation2 + $0x188] sm:$0xff]  ;;  %v1292_v53 = vmul.f32 %v2442_v60, %v1221_v27  ;;  %v1361_v48 = vadd.f32 %v2444_v20, %v1290_v34 }
 0x1cf   : > { %v1907_v55 = vpop.eup %1906  ;;  %1460 = vst [vmem:[#allocation7 + $0x88] sm:$0xff] %v1905_v50  ;;  %1926 = vtanh.f32 %v1343_v40  ;;  %v1223_v40 = vld [vmem:[#allocation2 + $0x190] sm:$0xff]  ;;  %v1293_v45 = vmul.f32 %v2442_v60, %v1222_v28  ;;  %v1362_v54 = vadd.f32 %v2444_v20, %v1291_v49 }
 0x1d0   : > { %v1909_v18 = vpop.eup %1908  ;;  %1461 = vst [vmem:[#allocation7 + $0x90] sm:$0xff] %v1907_v55  ;;  %1928 = vtanh.f32 %v1344_v59  ;;  %v1224_v59 = vld [vmem:[#allocation2 + $0x198] sm:$0xff]  ;;  %v1294_v50 = vmul.f32 %v2442_v60, %v1223_v40  ;;  %v1363_v61 = vadd.f32 %v2444_v20, %v1292_v53 }
 0x1d1   : > { %v1911_v0 = vpop.eup %1910  ;;  %1462 = vst [vmem:[#allocation7 + $0x98] sm:$0xff] %v1909_v18  ;;  %1930 = vtanh.f32 %v1345_v46  ;;  %v1225_v46 = vld [vmem:[#allocation2 + $0x1a0] sm:$0xff]  ;;  %v1295_v55 = vmul.f32 %v2442_v60, %v1224_v59  ;;  %v1364_v37 = vadd.f32 %v2444_v20, %v1293_v45 }
 0x1d2   : > { %v1913_v3 = vpop.eup %1912  ;;  %1463 = vst [vmem:[#allocation7 + $0xa0] sm:$0xff] %v1911_v0  ;;  %1932 = vtanh.f32 %v1346_v11  ;;  %v1226_v11 = vld [vmem:[#allocation2 + $0x1a8] sm:$0xff]  ;;  %v1296_v18 = vmul.f32 %v2442_v60, %v1225_v46  ;;  %v1365_v44 = vadd.f32 %v2444_v20, %v1294_v50 }
 0x1d3   : > { %v1915_v42 = vpop.eup %1914  ;;  %1464 = vst [vmem:[#allocation7 + $0xa8] sm:$0xff] %v1913_v3  ;;  %1934 = vtanh.f32 %v1347_v8  ;;  %v1227_v8 = vld [vmem:[#allocation2 + $0x1b0] sm:$0xff]  ;;  %v1297_v0 = vmul.f32 %v2442_v60, %v1226_v11  ;;  %v1366_v4 = vadd.f32 %v2444_v20, %v1295_v55 }
 0x1d4   : > { %v1917_v16 = vpop.eup %1916  ;;  %1465 = vst [vmem:[#allocation7 + $0xb0] sm:$0xff] %v1915_v42  ;;  %1936 = vtanh.f32 %v1348_v51  ;;  %v1228_v51 = vld [vmem:[#allocation2 + $0x1b8] sm:$0xff]  ;;  %v1298_v3 = vmul.f32 %v2442_v60, %v1227_v8  ;;  %v1367_v1 = vadd.f32 %v2444_v20, %v1296_v18 }
 0x1d5   : > { %v1919_v15 = vpop.eup %1918  ;;  %1466 = vst [vmem:[#allocation7 + $0xb8] sm:$0xff] %v1917_v16  ;;  %1938 = vtanh.f32 %v1349_v58  ;;  %v1229_v58 = vld [vmem:[#allocation2 + $0x1c0] sm:$0xff]  ;;  %v1299_v42 = vmul.f32 %v2442_v60, %v1228_v51  ;;  %v1368_v12 = vadd.f32 %v2444_v20, %v1297_v0 }
 0x1d6   : > { %v1921_v6 = vpop.eup %1920  ;;  %1467 = vst [vmem:[#allocation7 + $0xc0] sm:$0xff] %v1919_v15  ;;  %1940 = vtanh.f32 %v1350_v33  ;;  %v1230_v33 = vld [vmem:[#allocation2 + $0x1c8] sm:$0xff]  ;;  %v1300_v16 = vmul.f32 %v2442_v60, %v1229_v58  ;;  %v1369_v14 = vadd.f32 %v2444_v20, %v1298_v3 }
 0x1d7   : > { %v1923_v29 = vpop.eup %1922  ;;  %1468 = vst [vmem:[#allocation7 + $0xc8] sm:$0xff] %v1921_v6  ;;  %1942 = vtanh.f32 %v1351_v5  ;;  %v1231_v5 = vld [vmem:[#allocation2 + $0x1d0] sm:$0xff]  ;;  %v1301_v15 = vmul.f32 %v2442_v60, %v1230_v33  ;;  %v1370_v30 = vadd.f32 %v2444_v20, %v1299_v42 }
 0x1d8   : > { %v1925_v36 = vpop.eup %1924  ;;  %1469 = vst [vmem:[#allocation7 + $0xd0] sm:$0xff] %v1923_v29  ;;  %1944 = vtanh.f32 %v1352_v13  ;;  %v1232_v13 = vld [vmem:[#allocation2 + $0x1d8] sm:$0xff]  ;;  %v1302_v6 = vmul.f32 %v2442_v60, %v1231_v5  ;;  %v1371_v24 = vadd.f32 %v2444_v20, %v1300_v16 }
 0x1d9   : > { %v1927_v26 = vpop.eup %1926  ;;  %1470 = vst [vmem:[#allocation7 + $0xd8] sm:$0xff] %v1925_v36  ;;  %1946 = vtanh.f32 %v1353_v63  ;;  %v1233_v63 = vld [vmem:[#allocation2 + $0x1e0] sm:$0xff]  ;;  %v1303_v29 = vmul.f32 %v2442_v60, %v1232_v13  ;;  %v1372_v27 = vadd.f32 %v2444_v20, %v1301_v15 }
 0x1da   : > { %v1929_v32 = vpop.eup %1928  ;;  %1471 = vst [vmem:[#allocation7 + $0xe0] sm:$0xff] %v1927_v26  ;;  %1948 = vtanh.f32 %v1354_v19  ;;  %v1234_v19 = vld [vmem:[#allocation2 + $0x1e8] sm:$0xff]  ;;  %v1304_v36 = vmul.f32 %v2442_v60, %v1233_v63  ;;  %v1373_v34 = vadd.f32 %v2444_v20, %v1302_v6 }
 0x1db   : > { %v1931_v35 = vpop.eup %1930  ;;  %1472 = vst [vmem:[#allocation7 + $0xe8] sm:$0xff] %v1929_v32  ;;  %1950 = vtanh.f32 %v1355_v22  ;;  %v1235_v22 = vld [vmem:[#allocation2 + $0x1f0] sm:$0xff]  ;;  %v1305_v26 = vmul.f32 %v2442_v60, %v1234_v19 }
 0x1dc   : > { %v1933_v43 = vpop.eup %1932  ;;  %1473 = vst [vmem:[#allocation7 + $0xf0] sm:$0xff] %v1931_v35  ;;  %1952 = vtanh.f32 %v1356_v25  ;;  %v1236_v25 = vld [vmem:[#allocation2 + $0x1f8] sm:$0xff]  ;;  %v1306_v28 = vmul.f32 %v2442_v60, %v1235_v22  ;;  %v1375_v35 = vadd.f32 %v2444_v20, %v1304_v36 }
 0x1dd   : > { %v1935_v56 = vpop.eup %1934  ;;  %1474 = vst [vmem:[#allocation7 + $0xf8] sm:$0xff] %v1933_v43  ;;  %1954 = vtanh.f32 %v1357_v31  ;;  %v1307_v49 = vmul.f32 %v2442_v60, %v1236_v25  ;;  %v1376_v53 = vadd.f32 %v2444_v20, %v1305_v26 }
 0x1de   : > { %v1937_v52 = vpop.eup %1936  ;;  %1475 = vst [vmem:[#allocation7 + $0x100] sm:$0xff] %v1935_v56  ;;  %1956 = vtanh.f32 %v1358_v39  ;;  %v1374_v39 = vadd.f32 %v2444_v20, %v1303_v29  ;;  %v1377_v43 = vadd.f32 %v2444_v20, %v1306_v28 }
 0x1df   : > { %v1939_v57 = vpop.eup %1938  ;;  %1476 = vst [vmem:[#allocation7 + $0x108] sm:$0xff] %v1937_v52  ;;  %1958 = vtanh.f32 %v1359_v41  ;;  %v1378_v60 = vadd.f32 %v2444_v20, %v1307_v49 }
 0x1e0   : > { %v1941_v62 = vpop.eup %1940  ;;  %1477 = vst [vmem:[#allocation7 + $0x110] sm:$0xff] %v1939_v57  ;;  %1960 = vtanh.f32 %v1360_v47 }
 0x1e1   : > { %v1943_v2 = vpop.eup %1942  ;;  %1478 = vst [vmem:[#allocation7 + $0x118] sm:$0xff] %v1941_v62  ;;  %1962 = vtanh.f32 %v1361_v48 }
 0x1e2   : > { %v1945_v9 = vpop.eup %1944  ;;  %1479 = vst [vmem:[#allocation7 + $0x120] sm:$0xff] %v1943_v2  ;;  %1964 = vtanh.f32 %v1362_v54 }
 0x1e3   : > { %v1947_v10 = vpop.eup %1946  ;;  %1480 = vst [vmem:[#allocation7 + $0x128] sm:$0xff] %v1945_v9  ;;  %1966 = vtanh.f32 %v1363_v61 }
 0x1e4   : > { %v1949_v7 = vpop.eup %1948  ;;  %1481 = vst [vmem:[#allocation7 + $0x130] sm:$0xff] %v1947_v10  ;;  %1968 = vtanh.f32 %v1364_v37 }
 0x1e5   : > { %v1951_v17 = vpop.eup %1950  ;;  %1482 = vst [vmem:[#allocation7 + $0x138] sm:$0xff] %v1949_v7  ;;  %1970 = vtanh.f32 %v1365_v44 }
 0x1e6   : > { %v1953_v21 = vpop.eup %1952  ;;  %1483 = vst [vmem:[#allocation7 + $0x140] sm:$0xff] %v1951_v17  ;;  %1972 = vtanh.f32 %v1366_v4 }
 0x1e7   : > { %v1955_v23 = vpop.eup %1954  ;;  %1484 = vst [vmem:[#allocation7 + $0x148] sm:$0xff] %v1953_v21  ;;  %1974 = vtanh.f32 %v1367_v1 }
 0x1e8   : > { %v1957_v38 = vpop.eup %1956  ;;  %1485 = vst [vmem:[#allocation7 + $0x150] sm:$0xff] %v1955_v23  ;;  %1976 = vtanh.f32 %v1368_v12 }
 0x1e9   : > { %v1959_v31 = vpop.eup %1958  ;;  %1486 = vst [vmem:[#allocation7 + $0x158] sm:$0xff] %v1957_v38  ;;  %1978 = vtanh.f32 %v1369_v14 }
 0x1ea   : > { %v1961_v32 = vpop.eup %1960  ;;  %1487 = vst [vmem:[#allocation7 + $0x160] sm:$0xff] %v1959_v31  ;;  %1980 = vtanh.f32 %v1370_v30 }
 0x1eb   : > { %v1963_v40 = vpop.eup %1962  ;;  %1488 = vst [vmem:[#allocation7 + $0x168] sm:$0xff] %v1961_v32  ;;  %1982 = vtanh.f32 %v1371_v24 }
 0x1ec   : > { %v1965_v41 = vpop.eup %1964  ;;  %1489 = vst [vmem:[#allocation7 + $0x170] sm:$0xff] %v1963_v40  ;;  %1984 = vtanh.f32 %v1372_v27 }
 0x1ed   : > { %v1967_v59 = vpop.eup %1966  ;;  %1490 = vst [vmem:[#allocation7 + $0x178] sm:$0xff] %v1965_v41  ;;  %1986 = vtanh.f32 %v1373_v34 }
 0x1ee   : > { %v1969_v47 = vpop.eup %1968  ;;  %1491 = vst [vmem:[#allocation7 + $0x180] sm:$0xff] %v1967_v59  ;;  %1988 = vtanh.f32 %v1374_v39 }
 0x1ef   : > { %v1971_v45 = vpop.eup %1970  ;;  %1492 = vst [vmem:[#allocation7 + $0x188] sm:$0xff] %v1969_v47  ;;  %1990 = vtanh.f32 %v1375_v35 }
 0x1f0   : > { %v1973_v46 = vpop.eup %1972  ;;  %1493 = vst [vmem:[#allocation7 + $0x190] sm:$0xff] %v1971_v45  ;;  %1992 = vtanh.f32 %v1376_v53 }
 0x1f1   : > { %v1975_v56 = vpop.eup %1974  ;;  %1494 = vst [vmem:[#allocation7 + $0x198] sm:$0xff] %v1973_v46  ;;  %1994 = vtanh.f32 %v1377_v43 }
 0x1f2   : > { %v1977_v48 = vpop.eup %1976  ;;  %1495 = vst [vmem:[#allocation7 + $0x1a0] sm:$0xff] %v1975_v56  ;;  %1996 = vtanh.f32 %v1378_v60 }
 0x1f3   : > { %v1979_v50 = vpop.eup %1978  ;;  %1496 = vst [vmem:[#allocation7 + $0x1a8] sm:$0xff] %v1977_v48 }
 0x1f4   : > { %v1981_v11 = vpop.eup %1980  ;;  %1497 = vst [vmem:[#allocation7 + $0x1b0] sm:$0xff] %v1979_v50 }
 0x1f5   : > { %v1983_v52 = vpop.eup %1982  ;;  %1498 = vst [vmem:[#allocation7 + $0x1b8] sm:$0xff] %v1981_v11 }
 0x1f6   : > { %v1985_v54 = vpop.eup %1984  ;;  %1499 = vst [vmem:[#allocation7 + $0x1c0] sm:$0xff] %v1983_v52 }
 0x1f7   : > { %v1987_v20 = vpop.eup %1986  ;;  %1500 = vst [vmem:[#allocation7 + $0x1c8] sm:$0xff] %v1985_v54 }
 0x1f8   : > { %v1989_v55 = vpop.eup %1988  ;;  %1501 = vst [vmem:[#allocation7 + $0x1d0] sm:$0xff] %v1987_v20 }
 0x1f9   : > { %v1991_v8 = vpop.eup %1990  ;;  %1502 = vst [vmem:[#allocation7 + $0x1d8] sm:$0xff] %v1989_v55 }
 0x1fa   : > { %v1993_v57 = vpop.eup %1992  ;;  %1503 = vst [vmem:[#allocation7 + $0x1e0] sm:$0xff] %v1991_v8 }
 0x1fb   : > { %v1995_v61 = vpop.eup %1994  ;;  %1504 = vst [vmem:[#allocation7 + $0x1e8] sm:$0xff] %v1993_v57 }
 0x1fc   : > { %v1997_v18 = vpop.eup %1996  ;;  %1505 = vst [vmem:[#allocation7 + $0x1f0] sm:$0xff] %v1995_v61 }
 0x1fd   : > { %1506 = vst [vmem:[#allocation7 + $0x1f8] sm:$0xff] %v1997_v18 }
 0x1fe PF: > { %p2576_p8 = scmp.eq.s32.totalorder %s1596_s18, 1  ;;  %s2053_s9 = smov [#allocation7]  }
 0x1ff   : > { %s1522_s10 = sshll.u32 %s2053_s9, 4  ;;  %s1523_s10 = int_to_ptr.vmem [resolvable:$true] %s1522_s10 }
 0x200   : > { %s1998_s11 = scalar_lea.vmem %s1523_s10, 8192  ;;  %s2004_s12 = scalar_lea.vmem %s1523_s10, 16384 }
 0x201   : > { %p1999_p9 = scmp.ne.s32.totalorder %s1523_s10, %s1998_s11  ;;  %p2005_p12 = scmp.lt.s32.totalorder %s1523_s10, %s1523_s10 }
 0x202   : > { %p2006_p13 = scmp.lt.s32.totalorder %s2004_s12, %s1998_s11 }
 0x203   : > { %p2000_p10 = pnand %p1999_p9, %p2576_p8 }
 0x204   : > { %p2007_p0 = por %p2006_p13, %p2005_p12 }
 0x205   : > { %p2001_p11 = pneg %p2000_p10 }
 0x207   : > { %p2008_p1 = pnand %p2007_p0, %p2001_p11 }
 0x209   : > { %2011 = shalt.err (!%p2008_p1)
}
 0x20a   : > { %s2012_s14 = scalar_lea.hbm %s2614_s4, 8192 }
 0x20b   : > { %p2013_p2 = scmp.ne.s32.totalorder %s2614_s4, %s2012_s14  ;;  %p2018_p5 = scmp.lt.u32.totalorder %s2012_s14, %s2614_s4 }
 0x20d   : > { %p2014_p3 = pnand %p2013_p2, %p2576_p8 }
 0x20f   : > { %p2015_p4 = pneg %p2014_p3 }
 0x211   : > { %p2020_p6 = pnand %p2018_p5, %p2015_p4 }
 0x213   : > { %2023 = shalt.err (!%p2020_p6)
}
 0x214   : > { %s2054_s25 = smov 128   ;;  %s2055_s26 = smov 8  }
 0x215   : > { %1795 = dma.vmem_to_hbm [thread:$0]  (%p2576_p8), %s1523_s10, 8192, %s2614_s4, [#allocation8], %s2054_s25, %s2054_s25, %s2055_s26  }
 0x216 PF: > { %p1803_p7 = scmp.ge.s32.totalorder %s2050_s17, 2  ;;  %p1804_p9 = scmp.eq.s32.totalorder %s1597_s19, 1 }
 0x218   : > { %p1799_p10 = pnand %p1804_p9, %p1803_p7 }
 0x21a   : > { %2037 = dma.done.wait (!%p1799_p10), [#allocation8], 8192  }
 0x21b   : > { %2039 = vsyncadd (!%p1799_p10), [#allocation8], 4294959104  ;;  %s17_s17 = sadd.s32 1, %s2050_s17   ;;  %s2616_s15 = smov %s2046_s16 }
 0x21c   : > { %p14_p11 = scmp.ge.s32.totalorder %s17_s17, 4   ;;  %s2617_s16 = smov %s2619_s20 }
 0x21e   :  { %16 = sbr.rel (!%p14_p11) target bundleno = 3 (0x3), region = 89 }
 0x225   :  { %1543 = vsyncpa [#allocation8], 1 }
 0x226   :  { %1545 = vsyncpa [#allocation8 + $0x1], 1 }

</bundles_post_ra>
